<compile_context>
chip_gen: v7x
topology: tpu7x:2x2x1
jax: 0.10.0
libtpu: 0.0.40
codegen_flags: <defaults>
</compile_context>

<pallas_src>
import math

import jax
import jax.numpy as jnp
from jax.experimental import pallas as pl
from jax.experimental.pallas import tpu as pltpu

# ----------------------------- model config ---------------------------------
L = 8            # sequence length
N = 2            # batch size
E = 32           # d_model
H = 4            # nhead
DH = E // H      # head dim
FF = 64          # dim_feedforward
EPS = 1e-5       # LayerNorm eps
NL = N * L       # flattened token count


# ------------------------------- kernel -------------------------------------
def _layer_norm(x, gamma, beta):
    mu = jnp.mean(x, axis=-1, keepdims=True)
    var = jnp.mean((x - mu) ** 2, axis=-1, keepdims=True)
    return (x - mu) * jax.lax.rsqrt(var + EPS) * gamma + beta


def encoder_layer_kernel(x_ref,                       # (L, N, E)  seq-first
                         wqkv_t_ref, bqkv_ref,        # (E, 3E), (1, 3E)
                         wo_t_ref, bo_ref,            # (E, E),  (1, E)
                         w1_t_ref, b1_ref,            # (E, FF), (1, FF)
                         w2_t_ref, b2_ref,            # (FF, E), (1, E)
                         g1_ref, be1_ref,             # (1, E),  (1, E)
                         g2_ref, be2_ref,             # (1, E),  (1, E)
                         out_ref,                     # (L, N, E)
                         wavg_ref,                    # (N, L, L)
                         whead_ref):                  # (N, H, L, L)
    # Regroup seq-first rows into batch-major token rows (row = n*L + l) so the
    # per-head (N, L, DH) views below are free leading-dim splits.  This
    # replaces the former wrapper-side jnp.transpose (a separate tiny XLA
    # kernel every call) with N in-kernel slice loads + one sublane concat.
    x = jnp.concatenate([x_ref[:, n, :] for n in range(N)], axis=0)     # (NL, E)

    # ---- QKV projection for all tokens at once (weights pre-transposed) ----
    qkv = jnp.dot(x, wqkv_t_ref[...],
                  preferred_element_type=jnp.float32) + bqkv_ref[...]   # (NL, 3E)

    scale = 1.0 / math.sqrt(DH)
    q_all = qkv[:, :E] * scale           # scale applied once for all heads

    # ---- attention scores, staged per head into the whead output buffer ----
    # whead_ref doubles as VMEM scratch so ONE batched softmax can run over
    # every (batch, head) row at once below.
    for h in range(H):
        qh = q_all[:, h * DH:(h + 1) * DH].reshape(N, L, DH)
        kh = qkv[:, E + h * DH:E + (h + 1) * DH].reshape(N, L, DH)
        whead_ref[:, h, :, :] = jnp.einsum(
            'bqd,bkd->bqk', qh, kh, preferred_element_type=jnp.float32)

    # ---- single batched softmax over all N*H attention rows ----
    s = whead_ref[...]                                          # (N, H, L, L)
    s = s - jnp.max(s, axis=-1, keepdims=True)
    p = jnp.exp(s)
    # exact reciprocal: approx=True would risk the 1e-5 probability tolerance
    p = p * pl.reciprocal(jnp.sum(p, axis=-1, keepdims=True), approx=False)
    whead_ref[...] = p                 # per-head probs, one full-array store

    # ---- PV + head-concat folded into the out-projection accumulation ----
    wavg = jnp.zeros((N, L, L), jnp.float32)
    attn = jnp.zeros((NL, E), jnp.float32)
    for h in range(H):
        ph = p[:, h, :, :]                                      # (N, L, L)
        wavg = wavg + ph
        vh = qkv[:, 2 * E + h * DH:2 * E + (h + 1) * DH].reshape(N, L, DH)
        o = jnp.einsum('bqk,bkd->bqd', ph, vh,
                       preferred_element_type=jnp.float32)      # (N, L, DH)
        # sum_h o_h @ Wo^T[h-block]  ==  concat_h(o_h) @ Wo^T
        attn = attn + jnp.dot(o.reshape(NL, DH),
                              wo_t_ref[h * DH:(h + 1) * DH, :],
                              preferred_element_type=jnp.float32)
    wavg_ref[...] = wavg * (1.0 / H)

    attn = attn + bo_ref[...]

    # ---- residual + LayerNorm1 (dropout1 is identity in eval) ----
    src1 = _layer_norm(x + attn, g1_ref[...], be1_ref[...])

    # ---- feed forward: linear1 -> relu -> linear2 ----
    h1 = jnp.maximum(
        jnp.dot(src1, w1_t_ref[...],
                preferred_element_type=jnp.float32) + b1_ref[...], 0.0)  # (NL, FF)
    ffn = jnp.dot(h1, w2_t_ref[...],
                  preferred_element_type=jnp.float32) + b2_ref[...]      # (NL, E)

    # ---- residual + LayerNorm2 (dropout2 is identity in eval) ----
    y = _layer_norm(src1 + ffn, g2_ref[...], be2_ref[...])

    # write back in the seq-first (L, N, E) layout (no wrapper transpose)
    for n in range(N):
        out_ref[:, n, :] = y[n * L:(n + 1) * L, :]


# ------------------------------- wrapper -------------------------------------
def _vmem_spec():
    # whole-array-resident in VMEM, no grid tiling (problem is ~50 KB total)
    return pl.BlockSpec(memory_space=pltpu.MemorySpace.VMEM)


def preprocess_params(params):
    """One-time (outside jit) layout prep: every weight transpose happens here,
    never per call (perf-review item 1)."""
    (wqkv, bqkv, wo, bo, w1, b1, w2, b2, g1, be1, g2, be2) = params
    return (wqkv.T, bqkv, wo.T, bo, w1.T, b1, w2.T, b2, g1, be1, g2, be2)


@jax.jit
def transformer_encoder_layer(src, prepped_params):
    """src: (L, N, E) float32 — PyTorch seq-first layout.
    Returns (out (L,N,E), head-avg probs (N,L,L), per-head probs (N,H,L,L))."""
    args = (src, *prepped_params)

    out_shapes = (
        jax.ShapeDtypeStruct((L, N, E), jnp.float32),      # output tokens
        jax.ShapeDtypeStruct((N, L, L), jnp.float32),      # head-avg attn probs
        jax.ShapeDtypeStruct((N, H, L, L), jnp.float32),   # per-head attn probs
    )

    return pl.pallas_call(
        encoder_layer_kernel,
        out_shape=out_shapes,
        in_specs=[_vmem_spec() for _ in args],
        out_specs=tuple(_vmem_spec() for _ in out_shapes),
        # explicit VMEM budget (irrelevant at ~50 KB, but stated so scaling the
        # layer up never silently relies on generation-dependent defaults)
        compiler_params=pltpu.CompilerParams(vmem_limit_bytes=32 * 1024 * 1024),
    )(*args)


# --------------------------- pure-JAX reference -------------------------------
def reference(src, params):
    (wqkv, bqkv, wo, bo, w1, b1, w2, b2, g1, be1, g2, be2) = params
    x = jnp.transpose(src, (1, 0, 2))               # (N, L, E)
    qkv = x @ wqkv.T + bqkv[0]
    q, k, v = jnp.split(qkv, 3, axis=-1)

    def split_heads(t):                             # (N, L, E) -> (N, H, L, DH)
        return jnp.transpose(t.reshape(N, L, H, DH), (0, 2, 1, 3))

    qh, kh, vh = split_heads(q), split_heads(k), split_heads(v)
    s = jnp.einsum('nhqd,nhkd->nhqk', qh * (1.0 / math.sqrt(DH)), kh)
    p = jax.nn.softmax(s, axis=-1)                  # (N, H, L, L)
    a = jnp.einsum('nhqk,nhkd->nhqd', p, vh)
    a = jnp.transpose(a, (0, 2, 1, 3)).reshape(N, L, E)
    attn_out = a @ wo.T + bo[0]
    src1 = x + attn_out

    def ln(t, g, b):
        mu = t.mean(-1, keepdims=True)
        var = ((t - mu) ** 2).mean(-1, keepdims=True)
        return (t - mu) * jax.lax.rsqrt(var + EPS) * g[0] + b[0]

    src1 = ln(src1, g1, be1)
    ffn = jnp.maximum(src1 @ w1.T + b1[0], 0.0) @ w2.T + b2[0]
    out = ln(src1 + ffn, g2, be2)
    return jnp.transpose(out, (1, 0, 2)), p.mean(axis=1), p


# --------------------------------- main ---------------------------------------
if __name__ == "__main__":
    key = jax.random.PRNGKey(0)
    ks = jax.random.split(key, 16)

    def u(k, shape, scale=0.1):
        return (jax.random.uniform(k, shape, jnp.float32) - 0.5) * 2.0 * scale

    params = (
        u(ks[0], (3 * E, E)),            # in_proj_weight
        u(ks[1], (1, 3 * E)),            # in_proj_bias
        u(ks[2], (E, E)),                # out_proj.weight
        u(ks[3], (1, E)),                # out_proj.bias
        u(ks[4], (FF, E)),               # linear1.weight
        u(ks[5], (1, FF)),               # linear1.bias
        u(ks[6], (E, FF)),               # linear2.weight
        u(ks[7], (1, E)),                # linear2.bias
        jnp.ones((1, E), jnp.float32),   # norm1.weight
        jnp.zeros((1, E), jnp.float32),  # norm1.bias
        jnp.ones((1, E), jnp.float32),   # norm2.weight
        jnp.zeros((1, E), jnp.float32),  # norm2.bias
    )

    # One-time parameter preprocessing: all transposes happen here, not per call.
    prepped = preprocess_params(params)

    src = u(ks[8], (L, N, E), scale=1.0)   # (seq, batch, d_model)

    out, wavg, whead = transformer_encoder_layer(src, prepped)
    jax.block_until_ready((out, wavg, whead))

    ref_out, ref_wavg, ref_whead = reference(src, params)
    assert jnp.allclose(out, ref_out, atol=1e-4, rtol=1e-4)
    assert jnp.allclose(wavg, ref_wavg, atol=1e-5, rtol=1e-4)
    assert jnp.allclose(whead, ref_whead, atol=1e-5, rtol=1e-4)

    print("KERNEL_OK")
</pallas_src>

<mosaic_0001>
module attributes {stable_mosaic.version = 11 : i64} {
  func.func @encoder_layer_kernel(%arg0: memref<8x2x32xf32, #tpu.memory_space<vmem>>, %arg1: memref<32x96xf32, #tpu.memory_space<vmem>>, %arg2: memref<1x96xf32, #tpu.memory_space<vmem>>, %arg3: memref<32x32xf32, #tpu.memory_space<vmem>>, %arg4: memref<1x32xf32, #tpu.memory_space<vmem>>, %arg5: memref<32x64xf32, #tpu.memory_space<vmem>>, %arg6: memref<1x64xf32, #tpu.memory_space<vmem>>, %arg7: memref<64x32xf32, #tpu.memory_space<vmem>>, %arg8: memref<1x32xf32, #tpu.memory_space<vmem>>, %arg9: memref<1x32xf32, #tpu.memory_space<vmem>>, %arg10: memref<1x32xf32, #tpu.memory_space<vmem>>, %arg11: memref<1x32xf32, #tpu.memory_space<vmem>>, %arg12: memref<1x32xf32, #tpu.memory_space<vmem>>, %arg13: memref<8x2x32xf32, #tpu.memory_space<vmem>>, %arg14: memref<2x8x8xf32, #tpu.memory_space<vmem>>, %arg15: memref<2x4x8x8xf32, #tpu.memory_space<vmem>>) attributes {dimension_semantics = [], scalar_prefetch = 0 : i64, scratch_operands = 0 : i64, tpu.core_type = #tpu.core_type<tc>} {
    %c0 = arith.constant 0 : index
    %c0_0 = arith.constant 0 : index
    %c0_1 = arith.constant 0 : index
    %0 = vector.load %arg0[%c0, %c0_0, %c0_1] : memref<8x2x32xf32, #tpu.memory_space<vmem>>, vector<8x1x32xf32>
    %1 = vector.shape_cast %0 : vector<8x1x32xf32> to vector<8x32xf32>
    %c0_2 = arith.constant 0 : index
    %c1 = arith.constant 1 : index
    %c0_3 = arith.constant 0 : index
    %2 = vector.load %arg0[%c0_2, %c1, %c0_3] : memref<8x2x32xf32, #tpu.memory_space<vmem>>, vector<8x1x32xf32>
    %3 = vector.shape_cast %2 : vector<8x1x32xf32> to vector<8x32xf32>
    %4 = tpu.concatenate %1, %3 in 0 : vector<8x32xf32>, vector<8x32xf32> -> vector<16x32xf32>
    %c0_4 = arith.constant 0 : index
    %c0_5 = arith.constant 0 : index
    %5 = vector.load %arg1[%c0_4, %c0_5] : memref<32x96xf32, #tpu.memory_space<vmem>>, vector<32x96xf32>
    %cst = arith.constant dense<0.000000e+00> : vector<16x96xf32>
    %6 = tpu.matmul %4, %5, %cst {dimension_numbers = #tpu.dot_dimension_numbers<[1], [0], [0], [1], [0, 0, 1, 1], [], []>} : vector<16x32xf32>, vector<32x96xf32>, vector<16x96xf32> -> vector<16x96xf32>
    %c0_6 = arith.constant 0 : index
    %c0_7 = arith.constant 0 : index
    %7 = vector.load %arg2[%c0_6, %c0_7] : memref<1x96xf32, #tpu.memory_space<vmem>>, vector<1x96xf32>
    %8 = vector.broadcast %7 : vector<1x96xf32> to vector<16x96xf32>
    %9 = arith.addf %6, %8 : vector<16x96xf32>
    %10 = vector.extract_strided_slice %9 {offsets = [0, 0], sizes = [16, 32], strides = [1, 1]} : vector<16x96xf32> to vector<16x32xf32>
    %cst_8 = arith.constant 0.353553385 : f32
    %11 = vector.broadcast %cst_8 : f32 to vector<16x32xf32>
    %12 = arith.mulf %10, %11 : vector<16x32xf32>
    %13 = vector.extract_strided_slice %12 {offsets = [0, 0], sizes = [16, 8], strides = [1, 1]} : vector<16x32xf32> to vector<16x8xf32>
    %14 = vector.shape_cast %13 : vector<16x8xf32> to vector<2x8x8xf32>
    %15 = vector.extract_strided_slice %9 {offsets = [0, 32], sizes = [16, 8], strides = [1, 1]} : vector<16x96xf32> to vector<16x8xf32>
    %16 = vector.shape_cast %15 : vector<16x8xf32> to vector<2x8x8xf32>
    "tpu.trace_start"() <{level = 10 : i32, message = "bqd,bkd->bqk"}> : () -> ()
    %cst_9 = arith.constant dense<0.000000e+00> : vector<2x8x8xf32>
    %17 = tpu.matmul %14, %16, %cst_9 {dimension_numbers = #tpu.dot_dimension_numbers<[2], [2], [1], [1], [0, 0, 0, 1, 1, 1], [0], [0]>} : vector<2x8x8xf32>, vector<2x8x8xf32>, vector<2x8x8xf32> -> vector<2x8x8xf32>
    "tpu.trace_stop"() : () -> ()
    %c0_10 = arith.constant 0 : index
    %c0_11 = arith.constant 0 : index
    %c0_12 = arith.constant 0 : index
    %c0_13 = arith.constant 0 : index
    %18 = vector.load %arg15[%c0_10, %c0_11, %c0_12, %c0_13] : memref<2x4x8x8xf32, #tpu.memory_space<vmem>>, vector<2x1x8x8xf32>
    %19 = vector.shape_cast %18 : vector<2x1x8x8xf32> to vector<2x8x8xf32>
    %20 = vector.shape_cast %17 : vector<2x8x8xf32> to vector<2x1x8x8xf32>
    tpu.vector_store %arg15[%c0_10, %c0_11, %c0_12, %c0_13], %20 {strides = array<i32>} : memref<2x4x8x8xf32, #tpu.memory_space<vmem>>, vector<2x1x8x8xf32>,
    %21 = vector.extract_strided_slice %12 {offsets = [0, 8], sizes = [16, 8], strides = [1, 1]} : vector<16x32xf32> to vector<16x8xf32>
    %22 = vector.shape_cast %21 : vector<16x8xf32> to vector<2x8x8xf32>
    %23 = vector.extract_strided_slice %9 {offsets = [0, 40], sizes = [16, 8], strides = [1, 1]} : vector<16x96xf32> to vector<16x8xf32>
    %24 = vector.shape_cast %23 : vector<16x8xf32> to vector<2x8x8xf32>
    "tpu.trace_start"() <{level = 10 : i32, message = "bqd,bkd->bqk"}> : () -> ()
    %cst_14 = arith.constant dense<0.000000e+00> : vector<2x8x8xf32>
    %25 = tpu.matmul %22, %24, %cst_14 {dimension_numbers = #tpu.dot_dimension_numbers<[2], [2], [1], [1], [0, 0, 0, 1, 1, 1], [0], [0]>} : vector<2x8x8xf32>, vector<2x8x8xf32>, vector<2x8x8xf32> -> vector<2x8x8xf32>
    "tpu.trace_stop"() : () -> ()
    %c0_15 = arith.constant 0 : index
    %c1_16 = arith.constant 1 : index
    %c0_17 = arith.constant 0 : index
    %c0_18 = arith.constant 0 : index
    %26 = vector.load %arg15[%c0_15, %c1_16, %c0_17, %c0_18] : memref<2x4x8x8xf32, #tpu.memory_space<vmem>>, vector<2x1x8x8xf32>
    %27 = vector.shape_cast %26 : vector<2x1x8x8xf32> to vector<2x8x8xf32>
    %28 = vector.shape_cast %25 : vector<2x8x8xf32> to vector<2x1x8x8xf32>
    tpu.vector_store %arg15[%c0_15, %c1_16, %c0_17, %c0_18], %28 {strides = array<i32>} : memref<2x4x8x8xf32, #tpu.memory_space<vmem>>, vector<2x1x8x8xf32>,
    %29 = vector.extract_strided_slice %12 {offsets = [0, 16], sizes = [16, 8], strides = [1, 1]} : vector<16x32xf32> to vector<16x8xf32>
    %30 = vector.shape_cast %29 : vector<16x8xf32> to vector<2x8x8xf32>
    %31 = vector.extract_strided_slice %9 {offsets = [0, 48], sizes = [16, 8], strides = [1, 1]} : vector<16x96xf32> to vector<16x8xf32>
    %32 = vector.shape_cast %31 : vector<16x8xf32> to vector<2x8x8xf32>
    "tpu.trace_start"() <{level = 10 : i32, message = "bqd,bkd->bqk"}> : () -> ()
    %cst_19 = arith.constant dense<0.000000e+00> : vector<2x8x8xf32>
    %33 = tpu.matmul %30, %32, %cst_19 {dimension_numbers = #tpu.dot_dimension_numbers<[2], [2], [1], [1], [0, 0, 0, 1, 1, 1], [0], [0]>} : vector<2x8x8xf32>, vector<2x8x8xf32>, vector<2x8x8xf32> -> vector<2x8x8xf32>
    "tpu.trace_stop"() : () -> ()
    %c0_20 = arith.constant 0 : index
    %c2 = arith.constant 2 : index
    %c0_21 = arith.constant 0 : index
    %c0_22 = arith.constant 0 : index
    %34 = vector.load %arg15[%c0_20, %c2, %c0_21, %c0_22] : memref<2x4x8x8xf32, #tpu.memory_space<vmem>>, vector<2x1x8x8xf32>
    %35 = vector.shape_cast %34 : vector<2x1x8x8xf32> to vector<2x8x8xf32>
    %36 = vector.shape_cast %33 : vector<2x8x8xf32> to vector<2x1x8x8xf32>
    tpu.vector_store %arg15[%c0_20, %c2, %c0_21, %c0_22], %36 {strides = array<i32>} : memref<2x4x8x8xf32, #tpu.memory_space<vmem>>, vector<2x1x8x8xf32>,
    %37 = vector.extract_strided_slice %12 {offsets = [0, 24], sizes = [16, 8], strides = [1, 1]} : vector<16x32xf32> to vector<16x8xf32>
    %38 = vector.shape_cast %37 : vector<16x8xf32> to vector<2x8x8xf32>
    %39 = vector.extract_strided_slice %9 {offsets = [0, 56], sizes = [16, 8], strides = [1, 1]} : vector<16x96xf32> to vector<16x8xf32>
    %40 = vector.shape_cast %39 : vector<16x8xf32> to vector<2x8x8xf32>
    "tpu.trace_start"() <{level = 10 : i32, message = "bqd,bkd->bqk"}> : () -> ()
    %cst_23 = arith.constant dense<0.000000e+00> : vector<2x8x8xf32>
    %41 = tpu.matmul %38, %40, %cst_23 {dimension_numbers = #tpu.dot_dimension_numbers<[2], [2], [1], [1], [0, 0, 0, 1, 1, 1], [0], [0]>} : vector<2x8x8xf32>, vector<2x8x8xf32>, vector<2x8x8xf32> -> vector<2x8x8xf32>
    "tpu.trace_stop"() : () -> ()
    %c0_24 = arith.constant 0 : index
    %c3 = arith.constant 3 : index
    %c0_25 = arith.constant 0 : index
    %c0_26 = arith.constant 0 : index
    %42 = vector.load %arg15[%c0_24, %c3, %c0_25, %c0_26] : memref<2x4x8x8xf32, #tpu.memory_space<vmem>>, vector<2x1x8x8xf32>
    %43 = vector.shape_cast %42 : vector<2x1x8x8xf32> to vector<2x8x8xf32>
    %44 = vector.shape_cast %41 : vector<2x8x8xf32> to vector<2x1x8x8xf32>
    tpu.vector_store %arg15[%c0_24, %c3, %c0_25, %c0_26], %44 {strides = array<i32>} : memref<2x4x8x8xf32, #tpu.memory_space<vmem>>, vector<2x1x8x8xf32>,
    %c0_27 = arith.constant 0 : index
    %c0_28 = arith.constant 0 : index
    %c0_29 = arith.constant 0 : index
    %c0_30 = arith.constant 0 : index
    %45 = vector.load %arg15[%c0_27, %c0_28, %c0_29, %c0_30] : memref<2x4x8x8xf32, #tpu.memory_space<vmem>>, vector<2x4x8x8xf32>
    %cst_31 = arith.constant dense<0xFF800000> : vector<2x4x8xf32>
    %46 = vector.multi_reduction <maximumf>, %45, %cst_31 [3] : vector<2x4x8x8xf32> to vector<2x4x8xf32>
    %47 = vector.shape_cast %46 : vector<2x4x8xf32> to vector<2x4x8x1xf32>
    %48 = vector.broadcast %47 : vector<2x4x8x1xf32> to vector<2x4x8x8xf32>
    %49 = arith.subf %45, %48 : vector<2x4x8x8xf32>
    %50 = math.exp %49 : vector<2x4x8x8xf32>
    %cst_32 = arith.constant dense<0.000000e+00> : vector<2x4x8xf32>
    %51 = vector.multi_reduction <add>, %50, %cst_32 [3] : vector<2x4x8x8xf32> to vector<2x4x8xf32>
    %52 = vector.shape_cast %51 : vector<2x4x8xf32> to vector<2x4x8x1xf32>
    %53 = tpu.reciprocal %52 : vector<2x4x8x1xf32> -> vector<2x4x8x1xf32>
    %54 = vector.broadcast %53 : vector<2x4x8x1xf32> to vector<2x4x8x8xf32>
    %55 = arith.mulf %50, %54 : vector<2x4x8x8xf32>
    %c0_33 = arith.constant 0 : index
    %c0_34 = arith.constant 0 : index
    %c0_35 = arith.constant 0 : index
    %c0_36 = arith.constant 0 : index
    %56 = vector.load %arg15[%c0_33, %c0_34, %c0_35, %c0_36] : memref<2x4x8x8xf32, #tpu.memory_space<vmem>>, vector<2x4x8x8xf32>
    tpu.vector_store %arg15[%c0_33, %c0_34, %c0_35, %c0_36], %55 {strides = array<i32>} : memref<2x4x8x8xf32, #tpu.memory_space<vmem>>, vector<2x4x8x8xf32>,
    %cst_37 = arith.constant 0.000000e+00 : f32
    %57 = vector.broadcast %cst_37 : f32 to vector<2x8x8xf32>
    %cst_38 = arith.constant 0.000000e+00 : f32
    %58 = vector.broadcast %cst_38 : f32 to vector<16x32xf32>
    %59 = vector.extract_strided_slice %55 {offsets = [0, 0, 0, 0], sizes = [2, 1, 8, 8], strides = [1, 1, 1, 1]} : vector<2x4x8x8xf32> to vector<2x1x8x8xf32>
    %60 = vector.shape_cast %59 : vector<2x1x8x8xf32> to vector<2x8x8xf32>
    %61 = arith.addf %57, %60 : vector<2x8x8xf32>
    %62 = vector.extract_strided_slice %9 {offsets = [0, 64], sizes = [16, 8], strides = [1, 1]} : vector<16x96xf32> to vector<16x8xf32>
    %63 = vector.shape_cast %62 : vector<16x8xf32> to vector<2x8x8xf32>
    "tpu.trace_start"() <{level = 10 : i32, message = "bqk,bkd->bqd"}> : () -> ()
    %cst_39 = arith.constant dense<0.000000e+00> : vector<2x8x8xf32>
    %64 = tpu.matmul %60, %63, %cst_39 {dimension_numbers = #tpu.dot_dimension_numbers<[2], [1], [1], [2], [0, 0, 0, 1, 1, 2], [0], [0]>} : vector<2x8x8xf32>, vector<2x8x8xf32>, vector<2x8x8xf32> -> vector<2x8x8xf32>
    "tpu.trace_stop"() : () -> ()
    %65 = vector.shape_cast %64 : vector<2x8x8xf32> to vector<16x8xf32>
    %c0_40 = arith.constant 0 : index
    %c0_41 = arith.constant 0 : index
    %66 = vector.load %arg3[%c0_40, %c0_41] : memref<32x32xf32, #tpu.memory_space<vmem>>, vector<8x32xf32>
    %cst_42 = arith.constant dense<0.000000e+00> : vector<16x32xf32>
    %67 = tpu.matmul %65, %66, %cst_42 {dimension_numbers = #tpu.dot_dimension_numbers<[1], [0], [0], [1], [0, 0, 1, 1], [], []>} : vector<16x8xf32>, vector<8x32xf32>, vector<16x32xf32> -> vector<16x32xf32>
    %68 = arith.addf %58, %67 : vector<16x32xf32>
    %69 = vector.extract_strided_slice %55 {offsets = [0, 1, 0, 0], sizes = [2, 1, 8, 8], strides = [1, 1, 1, 1]} : vector<2x4x8x8xf32> to vector<2x1x8x8xf32>
    %70 = vector.shape_cast %69 : vector<2x1x8x8xf32> to vector<2x8x8xf32>
    %71 = arith.addf %61, %70 : vector<2x8x8xf32>
    %72 = vector.extract_strided_slice %9 {offsets = [0, 72], sizes = [16, 8], strides = [1, 1]} : vector<16x96xf32> to vector<16x8xf32>
    %73 = vector.shape_cast %72 : vector<16x8xf32> to vector<2x8x8xf32>
    "tpu.trace_start"() <{level = 10 : i32, message = "bqk,bkd->bqd"}> : () -> ()
    %cst_43 = arith.constant dense<0.000000e+00> : vector<2x8x8xf32>
    %74 = tpu.matmul %70, %73, %cst_43 {dimension_numbers = #tpu.dot_dimension_numbers<[2], [1], [1], [2], [0, 0, 0, 1, 1, 2], [0], [0]>} : vector<2x8x8xf32>, vector<2x8x8xf32>, vector<2x8x8xf32> -> vector<2x8x8xf32>
    "tpu.trace_stop"() : () -> ()
    %75 = vector.shape_cast %74 : vector<2x8x8xf32> to vector<16x8xf32>
    %c8 = arith.constant 8 : index
    %c0_44 = arith.constant 0 : index
    %76 = vector.load %arg3[%c8, %c0_44] : memref<32x32xf32, #tpu.memory_space<vmem>>, vector<8x32xf32>
    %cst_45 = arith.constant dense<0.000000e+00> : vector<16x32xf32>
    %77 = tpu.matmul %75, %76, %cst_45 {dimension_numbers = #tpu.dot_dimension_numbers<[1], [0], [0], [1], [0, 0, 1, 1], [], []>} : vector<16x8xf32>, vector<8x32xf32>, vector<16x32xf32> -> vector<16x32xf32>
    %78 = arith.addf %68, %77 : vector<16x32xf32>
    %79 = vector.extract_strided_slice %55 {offsets = [0, 2, 0, 0], sizes = [2, 1, 8, 8], strides = [1, 1, 1, 1]} : vector<2x4x8x8xf32> to vector<2x1x8x8xf32>
    %80 = vector.shape_cast %79 : vector<2x1x8x8xf32> to vector<2x8x8xf32>
    %81 = arith.addf %71, %80 : vector<2x8x8xf32>
    %82 = vector.extract_strided_slice %9 {offsets = [0, 80], sizes = [16, 8], strides = [1, 1]} : vector<16x96xf32> to vector<16x8xf32>
    %83 = vector.shape_cast %82 : vector<16x8xf32> to vector<2x8x8xf32>
    "tpu.trace_start"() <{level = 10 : i32, message = "bqk,bkd->bqd"}> : () -> ()
    %cst_46 = arith.constant dense<0.000000e+00> : vector<2x8x8xf32>
    %84 = tpu.matmul %80, %83, %cst_46 {dimension_numbers = #tpu.dot_dimension_numbers<[2], [1], [1], [2], [0, 0, 0, 1, 1, 2], [0], [0]>} : vector<2x8x8xf32>, vector<2x8x8xf32>, vector<2x8x8xf32> -> vector<2x8x8xf32>
    "tpu.trace_stop"() : () -> ()
    %85 = vector.shape_cast %84 : vector<2x8x8xf32> to vector<16x8xf32>
    %c16 = arith.constant 16 : index
    %c0_47 = arith.constant 0 : index
    %86 = vector.load %arg3[%c16, %c0_47] : memref<32x32xf32, #tpu.memory_space<vmem>>, vector<8x32xf32>
    %cst_48 = arith.constant dense<0.000000e+00> : vector<16x32xf32>
    %87 = tpu.matmul %85, %86, %cst_48 {dimension_numbers = #tpu.dot_dimension_numbers<[1], [0], [0], [1], [0, 0, 1, 1], [], []>} : vector<16x8xf32>, vector<8x32xf32>, vector<16x32xf32> -> vector<16x32xf32>
    %88 = arith.addf %78, %87 : vector<16x32xf32>
    %89 = vector.extract_strided_slice %55 {offsets = [0, 3, 0, 0], sizes = [2, 1, 8, 8], strides = [1, 1, 1, 1]} : vector<2x4x8x8xf32> to vector<2x1x8x8xf32>
    %90 = vector.shape_cast %89 : vector<2x1x8x8xf32> to vector<2x8x8xf32>
    %91 = arith.addf %81, %90 : vector<2x8x8xf32>
    %92 = vector.extract_strided_slice %9 {offsets = [0, 88], sizes = [16, 8], strides = [1, 1]} : vector<16x96xf32> to vector<16x8xf32>
    %93 = vector.shape_cast %92 : vector<16x8xf32> to vector<2x8x8xf32>
    "tpu.trace_start"() <{level = 10 : i32, message = "bqk,bkd->bqd"}> : () -> ()
    %cst_49 = arith.constant dense<0.000000e+00> : vector<2x8x8xf32>
    %94 = tpu.matmul %90, %93, %cst_49 {dimension_numbers = #tpu.dot_dimension_numbers<[2], [1], [1], [2], [0, 0, 0, 1, 1, 2], [0], [0]>} : vector<2x8x8xf32>, vector<2x8x8xf32>, vector<2x8x8xf32> -> vector<2x8x8xf32>
    "tpu.trace_stop"() : () -> ()
    %95 = vector.shape_cast %94 : vector<2x8x8xf32> to vector<16x8xf32>
    %c24 = arith.constant 24 : index
    %c0_50 = arith.constant 0 : index
    %96 = vector.load %arg3[%c24, %c0_50] : memref<32x32xf32, #tpu.memory_space<vmem>>, vector<8x32xf32>
    %cst_51 = arith.constant dense<0.000000e+00> : vector<16x32xf32>
    %97 = tpu.matmul %95, %96, %cst_51 {dimension_numbers = #tpu.dot_dimension_numbers<[1], [0], [0], [1], [0, 0, 1, 1], [], []>} : vector<16x8xf32>, vector<8x32xf32>, vector<16x32xf32> -> vector<16x32xf32>
    %98 = arith.addf %88, %97 : vector<16x32xf32>
    %cst_52 = arith.constant 2.500000e-01 : f32
    %99 = vector.broadcast %cst_52 : f32 to vector<2x8x8xf32>
    %100 = arith.mulf %91, %99 : vector<2x8x8xf32>
    %c0_53 = arith.constant 0 : index
    %c0_54 = arith.constant 0 : index
    %c0_55 = arith.constant 0 : index
    %101 = vector.load %arg14[%c0_53, %c0_54, %c0_55] : memref<2x8x8xf32, #tpu.memory_space<vmem>>, vector<2x8x8xf32>
    tpu.vector_store %arg14[%c0_53, %c0_54, %c0_55], %100 {strides = array<i32>} : memref<2x8x8xf32, #tpu.memory_space<vmem>>, vector<2x8x8xf32>,
    %c0_56 = arith.constant 0 : index
    %c0_57 = arith.constant 0 : index
    %102 = vector.load %arg4[%c0_56, %c0_57] : memref<1x32xf32, #tpu.memory_space<vmem>>, vector<1x32xf32>
    %103 = vector.broadcast %102 : vector<1x32xf32> to vector<16x32xf32>
    %104 = arith.addf %98, %103 : vector<16x32xf32>
    %105 = arith.addf %4, %104 : vector<16x32xf32>
    %c0_58 = arith.constant 0 : index
    %c0_59 = arith.constant 0 : index
    %106 = vector.load %arg9[%c0_58, %c0_59] : memref<1x32xf32, #tpu.memory_space<vmem>>, vector<1x32xf32>
    %c0_60 = arith.constant 0 : index
    %c0_61 = arith.constant 0 : index
    %107 = vector.load %arg10[%c0_60, %c0_61] : memref<1x32xf32, #tpu.memory_space<vmem>>, vector<1x32xf32>
    %cst_62 = arith.constant dense<0.000000e+00> : vector<16xf32>
    %108 = vector.multi_reduction <add>, %105, %cst_62 [1] : vector<16x32xf32> to vector<16xf32>
    %109 = vector.shape_cast %108 : vector<16xf32> to vector<16x1xf32>
    %cst_63 = arith.constant 3.200000e+01 : f32
    %110 = vector.broadcast %cst_63 : f32 to vector<16x1xf32>
    %111 = arith.divf %109, %110 : vector<16x1xf32>
    %112 = vector.broadcast %111 : vector<16x1xf32> to vector<16x32xf32>
    %113 = arith.subf %105, %112 : vector<16x32xf32>
    %114 = arith.mulf %113, %113 : vector<16x32xf32>
    %cst_64 = arith.constant dense<0.000000e+00> : vector<16xf32>
    %115 = vector.multi_reduction <add>, %114, %cst_64 [1] : vector<16x32xf32> to vector<16xf32>
    %116 = vector.shape_cast %115 : vector<16xf32> to vector<16x1xf32>
    %cst_65 = arith.constant 3.200000e+01 : f32
    %117 = vector.broadcast %cst_65 : f32 to vector<16x1xf32>
    %118 = arith.divf %116, %117 : vector<16x1xf32>
    %119 = vector.broadcast %111 : vector<16x1xf32> to vector<16x32xf32>
    %120 = arith.subf %105, %119 : vector<16x32xf32>
    %cst_66 = arith.constant 9.99999974E-6 : f32
    %121 = vector.broadcast %cst_66 : f32 to vector<16x1xf32>
    %122 = arith.addf %118, %121 : vector<16x1xf32>
    %123 = math.rsqrt %122 : vector<16x1xf32>
    %124 = vector.broadcast %123 : vector<16x1xf32> to vector<16x32xf32>
    %125 = arith.mulf %120, %124 : vector<16x32xf32>
    %126 = vector.broadcast %106 : vector<1x32xf32> to vector<16x32xf32>
    %127 = arith.mulf %125, %126 : vector<16x32xf32>
    %128 = vector.broadcast %107 : vector<1x32xf32> to vector<16x32xf32>
    %129 = arith.addf %127, %128 : vector<16x32xf32>
    %c0_67 = arith.constant 0 : index
    %c0_68 = arith.constant 0 : index
    %130 = vector.load %arg5[%c0_67, %c0_68] : memref<32x64xf32, #tpu.memory_space<vmem>>, vector<32x64xf32>
    %cst_69 = arith.constant dense<0.000000e+00> : vector<16x64xf32>
    %131 = tpu.matmul %129, %130, %cst_69 {dimension_numbers = #tpu.dot_dimension_numbers<[1], [0], [0], [1], [0, 0, 1, 1], [], []>} : vector<16x32xf32>, vector<32x64xf32>, vector<16x64xf32> -> vector<16x64xf32>
    %c0_70 = arith.constant 0 : index
    %c0_71 = arith.constant 0 : index
    %132 = vector.load %arg6[%c0_70, %c0_71] : memref<1x64xf32, #tpu.memory_space<vmem>>, vector<1x64xf32>
    %133 = vector.broadcast %132 : vector<1x64xf32> to vector<16x64xf32>
    %134 = arith.addf %131, %133 : vector<16x64xf32>
    %cst_72 = arith.constant 0.000000e+00 : f32
    %135 = vector.broadcast %cst_72 : f32 to vector<16x64xf32>
    %136 = arith.maximumf %134, %135 : vector<16x64xf32>
    %c0_73 = arith.constant 0 : index
    %c0_74 = arith.constant 0 : index
    %137 = vector.load %arg7[%c0_73, %c0_74] : memref<64x32xf32, #tpu.memory_space<vmem>>, vector<64x32xf32>
    %cst_75 = arith.constant dense<0.000000e+00> : vector<16x32xf32>
    %138 = tpu.matmul %136, %137, %cst_75 {dimension_numbers = #tpu.dot_dimension_numbers<[1], [0], [0], [1], [0, 0, 1, 1], [], []>} : vector<16x64xf32>, vector<64x32xf32>, vector<16x32xf32> -> vector<16x32xf32>
    %c0_76 = arith.constant 0 : index
    %c0_77 = arith.constant 0 : index
    %139 = vector.load %arg8[%c0_76, %c0_77] : memref<1x32xf32, #tpu.memory_space<vmem>>, vector<1x32xf32>
    %140 = vector.broadcast %139 : vector<1x32xf32> to vector<16x32xf32>
    %141 = arith.addf %138, %140 : vector<16x32xf32>
    %142 = arith.addf %129, %141 : vector<16x32xf32>
    %c0_78 = arith.constant 0 : index
    %c0_79 = arith.constant 0 : index
    %143 = vector.load %arg11[%c0_78, %c0_79] : memref<1x32xf32, #tpu.memory_space<vmem>>, vector<1x32xf32>
    %c0_80 = arith.constant 0 : index
    %c0_81 = arith.constant 0 : index
    %144 = vector.load %arg12[%c0_80, %c0_81] : memref<1x32xf32, #tpu.memory_space<vmem>>, vector<1x32xf32>
    %cst_82 = arith.constant dense<0.000000e+00> : vector<16xf32>
    %145 = vector.multi_reduction <add>, %142, %cst_82 [1] : vector<16x32xf32> to vector<16xf32>
    %146 = vector.shape_cast %145 : vector<16xf32> to vector<16x1xf32>
    %cst_83 = arith.constant 3.200000e+01 : f32
    %147 = vector.broadcast %cst_83 : f32 to vector<16x1xf32>
    %148 = arith.divf %146, %147 : vector<16x1xf32>
    %149 = vector.broadcast %148 : vector<16x1xf32> to vector<16x32xf32>
    %150 = arith.subf %142, %149 : vector<16x32xf32>
    %151 = arith.mulf %150, %150 : vector<16x32xf32>
    %cst_84 = arith.constant dense<0.000000e+00> : vector<16xf32>
    %152 = vector.multi_reduction <add>, %151, %cst_84 [1] : vector<16x32xf32> to vector<16xf32>
    %153 = vector.shape_cast %152 : vector<16xf32> to vector<16x1xf32>
    %cst_85 = arith.constant 3.200000e+01 : f32
    %154 = vector.broadcast %cst_85 : f32 to vector<16x1xf32>
    %155 = arith.divf %153, %154 : vector<16x1xf32>
    %156 = vector.broadcast %148 : vector<16x1xf32> to vector<16x32xf32>
    %157 = arith.subf %142, %156 : vector<16x32xf32>
    %cst_86 = arith.constant 9.99999974E-6 : f32
    %158 = vector.broadcast %cst_86 : f32 to vector<16x1xf32>
    %159 = arith.addf %155, %158 : vector<16x1xf32>
    %160 = math.rsqrt %159 : vector<16x1xf32>
    %161 = vector.broadcast %160 : vector<16x1xf32> to vector<16x32xf32>
    %162 = arith.mulf %157, %161 : vector<16x32xf32>
    %163 = vector.broadcast %143 : vector<1x32xf32> to vector<16x32xf32>
    %164 = arith.mulf %162, %163 : vector<16x32xf32>
    %165 = vector.broadcast %144 : vector<1x32xf32> to vector<16x32xf32>
    %166 = arith.addf %164, %165 : vector<16x32xf32>
    %167 = vector.extract_strided_slice %166 {offsets = [0, 0], sizes = [8, 32], strides = [1, 1]} : vector<16x32xf32> to vector<8x32xf32>
    %c0_87 = arith.constant 0 : index
    %c0_88 = arith.constant 0 : index
    %c0_89 = arith.constant 0 : index
    %168 = vector.load %arg13[%c0_87, %c0_88, %c0_89] : memref<8x2x32xf32, #tpu.memory_space<vmem>>, vector<8x1x32xf32>
    %169 = vector.shape_cast %168 : vector<8x1x32xf32> to vector<8x32xf32>
    %170 = vector.shape_cast %167 : vector<8x32xf32> to vector<8x1x32xf32>
    tpu.vector_store %arg13[%c0_87, %c0_88, %c0_89], %170 {strides = array<i32>} : memref<8x2x32xf32, #tpu.memory_space<vmem>>, vector<8x1x32xf32>,
    %171 = vector.extract_strided_slice %166 {offsets = [8, 0], sizes = [8, 32], strides = [1, 1]} : vector<16x32xf32> to vector<8x32xf32>
    %c0_90 = arith.constant 0 : index
    %c1_91 = arith.constant 1 : index
    %c0_92 = arith.constant 0 : index
    %172 = vector.load %arg13[%c0_90, %c1_91, %c0_92] : memref<8x2x32xf32, #tpu.memory_space<vmem>>, vector<8x1x32xf32>
    %173 = vector.shape_cast %172 : vector<8x1x32xf32> to vector<8x32xf32>
    %174 = vector.shape_cast %171 : vector<8x32xf32> to vector<8x1x32xf32>
    tpu.vector_store %arg13[%c0_90, %c1_91, %c0_92], %174 {strides = array<i32>} : memref<8x2x32xf32, #tpu.memory_space<vmem>>, vector<8x1x32xf32>,
    return
  }
}

</mosaic_0001>

<bundles_post_ra>
// kernel: transformer_encoder_layer.1
= control target key start
LH: loop header
LB: loop body
LE: loop exit
PB: predicated region body
PF: predicated region fallthrough
CT: control target
= control target key end

     0   :  { %21 = vsyncpa [#allocation3], 0  ;;  %s3287_s0 = inlined_call_operand.hbm [shape: f32[8,2,32], index: 0, kind: input, shape index: {}]   ;;  %s3288_s1 = inlined_call_operand.vmem [shape: f32[32,96], index: 1, kind: input, shape index: {}]   ;;  %s3289_s2 = inlined_call_operand.vmem [shape: f32[1,96], index: 2, kind: input, shape index: {}]   ;;  %s3290_s3 = inlined_call_operand.vmem [shape: f32[32,32], index: 3, kind: input, shape index: {}]   ;;  %s3291_s4 = inlined_call_operand.vmem [shape: f32[1,32], index: 4, kind: input, shape index: {}]   ;;  %s3292_s5 = inlined_call_operand.vmem [shape: f32[32,64], index: 5, kind: input, shape index: {}]   ;;  %s3293_s6 = inlined_call_operand.vmem [shape: f32[1,64], index: 6, kind: input, shape index: {}]   ;;  %s3294_s7 = inlined_call_operand.vmem [shape: f32[64,32], index: 7, kind: input, shape index: {}]   ;;  %s3295_s8 = inlined_call_operand.vmem [shape: f32[1,32], index: 8, kind: input, shape index: {}]   ;;  %s3296_s9 = inlined_call_operand.vmem [shape: f32[1,32], index: 9, kind: input, shape index: {}]   ;;  %s3297_s10 = inlined_call_operand.vmem [shape: f32[1,32], index: 10, kind: input, shape index: {}]   ;;  %s3298_s11 = inlined_call_operand.vmem [shape: f32[1,32], index: 11, kind: input, shape index: {}]   ;;  %s3299_s12 = inlined_call_operand.vmem [shape: f32[1,32], index: 12, kind: input, shape index: {}]   ;;  %s3300_s13 = inlined_call_operand.hbm [shape: f32[8,2,32], index: 13, kind: output, shape index: {0}]   ;;  %s3301_s14 = inlined_call_operand.hbm [shape: f32[2,8,8], index: 14, kind: output, shape index: {1}]   ;;  %s3302_s15 = inlined_call_operand.hbm [shape: f32[2,4,8,8], index: 15, kind: output, shape index: {2}]  }
   0x1   :  { %22 = vsyncpa [#allocation4], 0 }
   0x2   :  { %23 = vsyncpa [#allocation7], 0  ;;  %s2838_s18 = smov [#allocation2]   ;;  %s2744_s22 = scalar_lea.hbm %s3287_s0, 256 }
   0x3   :  { %s29_s19 = sshll.u32 %s2838_s18, 4  ;;  %p2745_p0 = scmp.ne.s32.totalorder %s3287_s0, %s2744_s22  ;;  %s30_s19 = int_to_ptr.vmem [resolvable:$true] %s29_s19 }
   0x4   :  { %p2748_p1 = scmp.lt.u32.totalorder %s2744_s22, %s3287_s0 }
   0x6   :  { %p2750_p2 = pnand %p2748_p1, %p2745_p0 }
   0x8   :  { %2753 = shalt.err (!%p2750_p2)
}
   0x9   :  { %s2754_s27 = scalar_lea.vmem %s30_s19, 256  ;;  %p2759_p4 = scmp.lt.s32.totalorder %s30_s19, %s30_s19 }
   0xa   :  { %p2755_p3 = scmp.ne.s32.totalorder %s30_s19, %s2754_s27  ;;  %p2760_p5 = scmp.lt.s32.totalorder %s2754_s27, %s2754_s27 }
   0xc   :  { %p2761_p6 = por %p2760_p5, %p2759_p4 }
   0xe   :  { %p2762_p7 = pnand %p2761_p6, %p2755_p3 }
  0x10   :  { %2765 = shalt.err (!%p2762_p7)
}
  0x11   :  { %s2839_s28 = smov 32   ;;  %s2840_s29 = smov 2  }
  0x12   :  { %35 = dma.hbm_to_vmem [thread:$0]  %s3287_s0, 256, %s30_s19, [#allocation3], %s2839_s28, %s2839_s28, %s2840_s29  }
  0x13   :  { %2832 = dma.done.wait [#allocation3], 256  }
  0x14   :  { %2833 = vsyncadd [#allocation3], 4294967040  ;;  %v132_v0 = vld [vmem:[%s3288_s1] sm:$0xff]  ;;  %v133_v1 = vld [vmem:[%s3288_s1 + $0x8] sm:$0xff]  ;;  %vm88_vm0 = vcmask 1041409   ;;  %vm91_vm1 = vcmask 1042434  }
  0x15   :  { %v134_v2 = vld [vmem:[%s3288_s1 + $0x10] sm:$0xff]  ;;  %v2644_v3 = vpack.c.bf16 %v133_v1, %v132_v0  ;;  %v135_v4 = vld [vmem:[%s3288_s1 + $0x18] sm:$0xff]  ;;  %v64_v5 = vld [vmem:[#allocation2 + $0x2] sm:$0x1]  ;;  %vm94_vm2 = vcmask 1043459   ;;  %vm97_vm3 = vcmask 1044484  }
  0x16   :  { %v2648_v6 = vpack.c.bf16 %v135_v4, %v134_v2  ;;  %v65_v7 = vld [vmem:[#allocation2 + $0x4] sm:$0x1]  ;;  %v66_v8 = vld [vmem:[#allocation2 + $0x6] sm:$0x1]  ;;  %v67_v9 = vld [vmem:[#allocation2 + $0x8] sm:$0x1] }
  0x17   :  { %2645 = vmatprep.subr.bf16.mxu1 %v2644_v3  ;;  %v63_v10 = vld [vmem:[#allocation2] sm:$0x1]  ;;  %v68_v11 = vld [vmem:[#allocation2 + $0xa] sm:$0x1]  ;;  %v69_v12 = vld [vmem:[#allocation2 + $0xc] sm:$0x1] }
  0x18   :  { %2647 = vmatpush3.bf16.msra.mxu1 %v2644_v3  ;;  %v70_v13 = vld [vmem:[#allocation2 + $0xe] sm:$0x1]  ;;  %v87_v14 = vrot.slane %v64_v5, 7  ;;  %v90_v15 = vrot.slane %v65_v7, 6  ;;  %v93_v16 = vrot.slane %v66_v8, 5  ;;  %v96_v17 = vrot.slane %v67_v9, 4 }
  0x19   :  { %2649 = vmatprep.subr.bf16.mxu1 %v2648_v6  ;;  %v99_v18 = vrot.slane %v68_v11, 3  ;;  %vm100_vm4 = vcmask 1045509   ;;  %vm103_vm5 = vcmask 1046534   ;;  %v72_v19 = vld [vmem:[#allocation2 + $0x3] sm:$0x1]  ;;  %v102_v25 = vrot.slane %v69_v12, 2 }
  0x1a   :  { %v89_v20 = vsel %vm88_vm0, %v87_v14, %v63_v10  ;;  %v73_v21 = vld [vmem:[#allocation2 + $0x5] sm:$0x1]  ;;  %v74_v22 = vld [vmem:[#allocation2 + $0x7] sm:$0x1]  ;;  %v75_v23 = vld [vmem:[#allocation2 + $0x9] sm:$0x1] }
  0x1b   :  { %v92_v24 = vsel %vm91_vm1, %v90_v15, %v89_v20  ;;  %v105_v26 = vrot.slane %v70_v13, 1  ;;  %v71_v27 = vld [vmem:[#allocation2 + $0x1] sm:$0x1]  ;;  %v76_v28 = vld [vmem:[#allocation2 + $0xb] sm:$0x1]  ;;  %v117_v31 = vrot.slane %v72_v19, 7 }
  0x1c   :  { %2651 = vmatpush3.bf16.msra.mxu1 %v2648_v6  ;;  %v95_v29 = vsel %vm94_vm2, %v93_v16, %v92_v24  ;;  %v77_v30 = vld [vmem:[#allocation2 + $0xd] sm:$0x1]  ;;  %v119_v32 = vrot.slane %v73_v21, 6  ;;  %v121_v33 = vrot.slane %v74_v22, 5  ;;  %vm106_vm6 = vcmask 1047559   ;;  %s2843_s19 = smov 88  }
  0x1d   :  { %v98_v34 = vsel %vm97_vm3, %v96_v17, %v95_v29  ;;  %v78_v35 = vld [vmem:[#allocation2 + $0xf] sm:$0x1]  ;;  %v123_v36 = vrot.slane %v75_v23, 4  ;;  %vm143_vm7 = vcmask 261120   ;;  %v118_v38 = vsel %vm88_vm0, %v117_v31, %v71_v27  ;;  %v2391_v51 = vld [vmem:[%s3289_s2] ss:$0 sm:$0xff] }
  0x1e   :  { %v101_v37 = vsel %vm100_vm4, %v99_v18, %v98_v34  ;;  %v125_v39 = vrot.slane %v76_v28, 3  ;;  %v120_v41 = vsel %vm91_vm1, %v119_v32, %v118_v38  ;;  %v127_v42 = vrot.slane %v77_v30, 2  ;;  %s2844_s26 = smov 96   ;;  %s2845_s2 = smov 120  }
  0x1f   :  { %v104_v40 = vsel %vm103_vm5, %v102_v25, %v101_v37  ;;  %v122_v44 = vsel %vm94_vm2, %v121_v33, %v120_v41  ;;  %v129_v45 = vrot.slane %v78_v35, 1  ;;  %v2841_v50 = vmov 0.0   ;;  %s2846_s27 = smov 112   ;;  %s2847_s30 = smov 80  }
  0x20   :  { %v2976_v43 = vsel %vm106_vm6, %v105_v26, %v104_v40  ;;  %v124_v46 = vsel %vm97_vm3, %v123_v36, %v122_v44  ;;  %2514 = vmatprep.subr.mxu1 %v2841_v50  ;;  %2524 = vmatprep.subr.mxu0 %v2841_v50  ;;  %vm2842_vm8 = vmmov 0   ;;  %s2848_s16 = smov 72   ;;  %s2849_s17 = smov 104   ;;  %vm228_vm9 = vcmask 64512  }
  0x21   :  { %2511 = vmatprep.mubr.msk.f32.mxu1 %vm143_vm7, %v2976_v43  ;;  %v126_v47 = vsel %vm100_vm4, %v125_v39, %v124_v46  ;;  %2526 = vmatprep.mubr.msk.f32.mxu0 %vm2842_vm8, %v2841_v50  ;;  %s2850_s18 = smov 64   ;;  %s2851_s20 = smov 56   ;;  %vm2082_vm10 = vcmask 523264  }
  0x22   :  { %v128_v48 = vsel %vm103_vm5, %v127_v42, %v126_v47  ;;  %s2852_s21 = smov 48   ;;  %s2853_s22 = smov 40  }
  0x23   :  { %v2985_v49 = vsel %vm106_vm6, %v129_v45, %v128_v48 }
  0x24   :  { %2512 = vmatmul.mubr.msk.f32.vlgmr.msra.gmra.mrb[0].mxu1 %vm143_vm7, %v2985_v49 }
  0x25   :  { %2516 = vmatprep.mubr.msk.f32.mxu1 %vm2842_vm8, %v2841_v50 }
  0xf7   :  { %v2513_v52 = vpop.f32.mrb[0].mxu1 }
  0xf8   :  { %v2998_v53 = vadd.f32 %v2513_v52, %v2391_v51  ;;  %v214_v54 = vpop.f32.mrb[1].mxu1 }
  0xf9   :  { %v3000_v55 = vadd.f32 %v2391_v51, %v214_v54 }
  0xfa   :  { %464 = vrot.lane.b32.xlu1 %v2998_v53, %s2843_s19  ;;  %v224_v56 = vmul.f32 0.35355338, %v2998_v53 }
  0xfb   :  { %226 = vrot.lane.b32.xlu0 %v3000_v55, %s2844_s26  ;;  %v223_v57 = vmul.f32 0.35355338, %v3000_v55 }
  0xfe   :  { %386 = vrot.lane.b32.xlu1 %v3000_v55, %s2843_s19 }
  0xff   :  { %305 = vrot.lane.b32.xlu0 %v2998_v53, %s2844_s26 }
 0x102   :  { %462 = vrot.lane.b32.xlu1 %v224_v56, %s2845_s2 }
 0x103   :  { %384 = vrot.lane.b32.xlu0 %v223_v57, %s2845_s2 }
 0x106   :  { %543 = vrot.lane.b32.xlu1 %v223_v57, %s2846_s27 }
 0x107   :  { %545 = vrot.lane.b32.xlu0 %v3000_v55, %s2847_s30 }
 0x10a   :  { %621 = vrot.lane.b32.xlu1 %v224_v56, %s2846_s27 }
 0x10b   :  { %623 = vrot.lane.b32.xlu0 %v2998_v53, %s2847_s30 }
 0x10e   :  { %782 = vrot.lane.b32.xlu1 %v2998_v53, %s2848_s16 }
 0x10f   :  { %704 = vrot.lane.b32.xlu0 %v3000_v55, %s2848_s16 }
 0x112   :  { %780 = vrot.lane.b32.xlu1 %v224_v56, %s2849_s17 }
 0x113   :  { %702 = vrot.lane.b32.xlu0 %v223_v57, %s2849_s17 }
 0x16c   :  { %v465_v58 = vpop.permute.xlu1 %464 }
 0x16d   :  { %v227_v59 = vpop.permute.xlu0 %226 }
 0x16e   :  { %2515 = vmatpush3.xpose.msk.msra.mxu1 %vm228_vm9, %v227_v59 }
 0x16f   :  { %2519 = vmatprep.subr.mxu1 %v2841_v50 }
 0x170   :  { %v387_v60 = vpop.permute.xlu1 %386 }
 0x171   :  { %2525 = vmatpush3.xpose.msk.msra.mxu0 %vm228_vm9, %v387_v60  ;;  %v306_v61 = vpop.permute.xlu0 %305  ;;  %2517 = vmatmul.mubr.msk.f32.vlgmr.msra.gmra.mrb[2].mxu1 %vm228_vm9, %v223_v57 }
 0x172   :  { %2520 = vmatpush3.xpose.msk.msra.mxu1 %vm228_vm9, %v306_v61  ;;  %2521 = vmatprep.mubr.msk.f32.mxu1 %vm2842_vm8, %v2841_v50 }
 0x173   :  { %2529 = vmatprep.subr.mxu1 %v2841_v50  ;;  %2534 = vmatprep.subr.mxu0 %v2841_v50 }
 0x174   :  { %v463_v62 = vpop.permute.xlu1 %462 }
 0x175   :  { %v385_v63 = vpop.permute.xlu0 %384  ;;  %2522 = vmatmul.mubr.msk.f32.vlgmr.msra.gmra.mrb[4].mxu1 %vm228_vm9, %v224_v56 }
 0x176   :  { %2527 = vmatmul.mubr.msk.f32.vlgmr.msra.gmra.mrb[0].mxu0 %vm228_vm9, %v385_v63  ;;  %2530 = vmatpush3.xpose.msk.msra.mxu1 %vm228_vm9, %v465_v58 }
 0x177   :  { %2531 = vmatprep.mubr.msk.f32.mxu1 %vm2842_vm8, %v2841_v50  ;;  %2536 = vmatprep.mubr.msk.f32.mxu0 %vm2842_vm8, %v2841_v50 }
 0x178   :  { %v544_v0 = vpop.permute.xlu1 %543  ;;  %2539 = vmatprep.subr.mxu1 %v2841_v50 }
 0x179   :  { %v546_v1 = vpop.permute.xlu0 %545  ;;  %2532 = vmatmul.mubr.msk.f32.vlgmr.msra.gmra.mrb[6].mxu1 %vm228_vm9, %v463_v62 }
 0x17a   :  { %2535 = vmatpush3.xpose.msk.msra.mxu0 %vm228_vm9, %v546_v1  ;;  %2541 = vmatprep.mubr.msk.f32.mxu1 %vm2842_vm8, %v2841_v50 }
 0x17b   :  { %2544 = vmatprep.subr.mxu0 %v2841_v50 }
 0x17c   :  { %v622_v2 = vpop.permute.xlu1 %621 }
 0x17d   :  { %2537 = vmatmul.mubr.msk.f32.vlgmr.msra.gmra.mrb[2].mxu0 %vm228_vm9, %v544_v0  ;;  %v624_v3 = vpop.permute.xlu0 %623 }
 0x17e   :  { %2540 = vmatpush3.xpose.msk.msra.mxu1 %vm228_vm9, %v624_v3  ;;  %2546 = vmatprep.mubr.msk.f32.mxu0 %vm2842_vm8, %v2841_v50 }
 0x17f   :  { %2549 = vmatprep.subr.mxu1 %v2841_v50 }
 0x180   :  { %v783_v4 = vpop.permute.xlu1 %782 }
 0x181   :  { %v705_v5 = vpop.permute.xlu0 %704  ;;  %2542 = vmatmul.mubr.msk.f32.vlgmr.msra.gmra.mrb[8].mxu1 %vm228_vm9, %v622_v2 }
 0x182   :  { %2545 = vmatpush3.xpose.msk.msra.mxu0 %vm228_vm9, %v705_v5  ;;  %2550 = vmatpush3.xpose.msk.msra.mxu1 %vm228_vm9, %v783_v4 }
 0x183   :  { %2551 = vmatprep.mubr.msk.f32.mxu1 %vm2842_vm8, %v2841_v50  ;;  %2554 = vmatprep.subr.mxu0 %v2841_v50 }
 0x184   :  { %v781_v6 = vpop.permute.xlu1 %780  ;;  %2559 = vmatprep.subr.mxu1 %v2841_v50 }
 0x185   :  { %v703_v7 = vpop.permute.xlu0 %702  ;;  %2552 = vmatmul.mubr.msk.f32.vlgmr.msra.gmra.mrb[10].mxu1 %vm228_vm9, %v781_v6 }
 0x186   :  { %2547 = vmatmul.mubr.msk.f32.vlgmr.msra.gmra.mrb[4].mxu0 %vm228_vm9, %v703_v7  ;;  %2561 = vmatprep.mubr.msk.f32.mxu1 %vm2842_vm8, %v2841_v50 }
 0x187   :  { %2556 = vmatprep.mubr.msk.f32.mxu0 %vm2842_vm8, %v2841_v50 }
 0x244   :  { %v300_v8 = vpop.f32.mrb[2].mxu1 }
 0x245   :  { %382 = vst.msk [vmem:[#allocation8] sm:$0xff] %vm228_vm9, %v300_v8  ;;  %v2518_v9 = vpop.f32.mrb[3].mxu1 }
 0x248   :  { %v378_v10 = vpop.f32.mrb[4].mxu1 }
 0x249   :  { %383 = vst.msk [vmem:[#allocation8 + $0x20] sm:$0xff] %vm228_vm9, %v378_v10  ;;  %v2523_v11 = vpop.f32.mrb[5].mxu1  ;;  %v458_v12 = vpop.f32.mrb[0].mxu0 }
 0x24a   :  { %541 = vst.msk [vmem:[#allocation8 + $0x8] sm:$0xff] %vm228_vm9, %v458_v12  ;;  %v2528_v13 = vpop.f32.mrb[1].mxu0 }
 0x24c   :  { %v536_v14 = vpop.f32.mrb[6].mxu1  ;;  %v861_v15 = vld [vmem:[#allocation8] sm:$0xff] }
 0x24d   :  { %542 = vst.msk [vmem:[#allocation8 + $0x28] sm:$0xff] %vm228_vm9, %v536_v14  ;;  %v2533_v16 = vpop.f32.mrb[7].mxu1  ;;  %v869_v17 = vsel %vm228_vm9, %v861_v15, -inf }
 0x24e   :  { %870 = vmax.xlane.f32.xlu0 %v869_v17 }
 0x250   :  { %v617_v18 = vpop.f32.mrb[2].mxu0  ;;  %v865_v19 = vld [vmem:[#allocation8 + $0x20] sm:$0xff] }
 0x251   :  { %700 = vst.msk [vmem:[#allocation8 + $0x10] sm:$0xff] %vm228_vm9, %v617_v18  ;;  %v2538_v20 = vpop.f32.mrb[3].mxu0  ;;  %v881_v21 = vsel %vm228_vm9, %v865_v19, -inf  ;;  %v862_v22 = vld [vmem:[#allocation8 + $0x8] sm:$0xff] }
 0x252   :  { %882 = vmax.xlane.f32.xlu1 %v881_v21  ;;  %v872_v23 = vsel %vm228_vm9, %v862_v22, -inf }
 0x253   :  { %873 = vmax.xlane.f32.xlu0 %v872_v23 }
 0x254   :  { %v695_v24 = vpop.f32.mrb[8].mxu1  ;;  %v866_v25 = vld [vmem:[#allocation8 + $0x28] sm:$0xff] }
 0x255   :  { %701 = vst.msk [vmem:[#allocation8 + $0x30] sm:$0xff] %vm228_vm9, %v695_v24  ;;  %v2543_v26 = vpop.f32.mrb[9].mxu1  ;;  %v884_v27 = vsel %vm228_vm9, %v866_v25, -inf }
 0x257   :  { %885 = vmax.xlane.f32.xlu0 %v884_v27 }
 0x258   :  { %v854_v28 = vpop.f32.mrb[10].mxu1  ;;  %v863_v29 = vld [vmem:[#allocation8 + $0x10] sm:$0xff] }
 0x259   :  { %860 = vst.msk [vmem:[#allocation8 + $0x38] sm:$0xff] %vm228_vm9, %v854_v28  ;;  %v776_v30 = vpop.f32.mrb[4].mxu0  ;;  %v2553_v31 = vpop.f32.mrb[11].mxu1  ;;  %v875_v32 = vsel %vm228_vm9, %v863_v29, -inf }
 0x25a   :  { %859 = vst.msk [vmem:[#allocation8 + $0x18] sm:$0xff] %vm228_vm9, %v776_v30  ;;  %v2548_v33 = vpop.f32.mrb[5].mxu0  ;;  %876 = vmax.xlane.f32.xlu1 %v875_v32 }
 0x25c   :  { %v867_v34 = vld [vmem:[#allocation8 + $0x30] sm:$0xff] }
 0x25d   :  { %v887_v35 = vsel %vm228_vm9, %v867_v34, -inf }
 0x25e   :  { %888 = vmax.xlane.f32.xlu0 %v887_v35 }
 0x260   :  { %v3086_v8 = vld [vmem:[#allocation8 + $0x38] sm:$0xff] }
 0x261   :  { %v890_v9 = vsel %vm228_vm9, %v3086_v8, -inf  ;;  %v3093_v10 = vld [vmem:[#allocation8 + $0x18] sm:$0xff] }
 0x262   :  { %v878_v11 = vsel %vm228_vm9, %v3093_v10, -inf }
 0x26b   :  { %967 = vrot.lane.b32.xlu1 %v3000_v55, %s2850_s18 }
 0x2db   :  { %v871_v36 = vpop.xlane.xlu0 %870 }
 0x2dc   :  { %v893_v37 = vsub.f32 %v861_v15, %v871_v36 }
 0x2de   :  { %v901_v38 = vmul.f32 1.442695, %v893_v37 }
 0x2df   :  { %v883_v39 = vpop.xlane.xlu1 %882 }
 0x2e0   :  { %2704 = vpow2.f32 %v901_v38  ;;  %v897_v40 = vsub.f32 %v865_v19, %v883_v39  ;;  %v874_v41 = vpop.xlane.xlu0 %873 }
 0x2e1   :  { %v894_v42 = vsub.f32 %v862_v22, %v874_v41  ;;  %v1119_v41 = vld [vmem:[%s3290_s3] sm:$0xff] }
 0x2e2   :  { %v909_v44 = vmul.f32 1.442695, %v897_v40  ;;  %v1274_v40 = vld [vmem:[%s3290_s3 + $0x8] sm:$0xff] }
 0x2e3   :  { %v903_v45 = vmul.f32 1.442695, %v894_v42 }
 0x2e4   :  { %2706 = vpow2.f32 %v909_v44  ;;  %v886_v46 = vpop.xlane.xlu0 %885 }
 0x2e5   :  { %2708 = vpow2.f32 %v903_v45  ;;  %v898_v47 = vsub.f32 %v866_v25, %v886_v46 }
 0x2e7   :  { %v911_v48 = vmul.f32 1.442695, %v898_v47  ;;  %v877_v51 = vpop.xlane.xlu1 %876 }
 0x2e8   :  { %v895_v52 = vsub.f32 %v863_v29, %v877_v51 }
 0x2e9   :  { %2710 = vpow2.f32 %v911_v48 }
 0x2ea   :  { %v2705_v54 = vpop.eup %2704  ;;  %v905_v56 = vmul.f32 1.442695, %v895_v52 }
 0x2eb   :  { %v968_v57 = vpop.permute.xlu1 %967  ;;  %v917_v58 = vsel %vm228_vm9, %v2705_v54, 0.0  ;;  %v889_v3 = vpop.xlane.xlu0 %888 }
 0x2ec   :  { %2712 = vpow2.f32 %v905_v56  ;;  %918 = vadd.xlane.f32.xlu1 %v917_v58  ;;  %2555 = vmatpush3.msra.mxu0 %v968_v57  ;;  %v899_v4 = vsub.f32 %v867_v34, %v889_v3 }
 0x2ed   :  { %2564 = vmatprep.subr.mxu0 %v2841_v50 }
 0x2ee   :  { %v2707_v59 = vpop.eup %2706  ;;  %v913_v5 = vmul.f32 1.442695, %v899_v4 }
 0x2ef   :  { %v2709_v60 = vpop.eup %2708  ;;  %v929_v61 = vsel %vm228_vm9, %v2707_v59, 0.0 }
 0x2f0   :  { %930 = vadd.xlane.f32.xlu0 %v929_v61  ;;  %v920_v62 = vsel %vm228_vm9, %v2709_v60, 0.0  ;;  %2714 = vpow2.f32 %v913_v5 }
 0x2f1   :  { %921 = vadd.xlane.f32.xlu1 %v920_v62 }
 0x2f3   :  { %v2711_v63 = vpop.eup %2710 }
 0x2f4   :  { %v932_v0 = vsel %vm228_vm9, %v2711_v63, 0.0 }
 0x2f5   :  { %933 = vadd.xlane.f32.xlu0 %v932_v0 }
 0x2f6   :  { %v3073_v1 = vpop.eup %2712 }
 0x2f7   :  { %v923_v2 = vsel %vm228_vm9, %v3073_v1, 0.0 }
 0x2f8   :  { %924 = vadd.xlane.f32.xlu1 %v923_v2 }
 0x2fa   :  { %v3082_v6 = vpop.eup %2714 }
 0x2fb   :  { %v935_v7 = vsel %vm228_vm9, %v3082_v6, 0.0 }
 0x309   :  { %1122 = vrot.lane.b32.xlu1 %v3000_v55, %s2851_s20 }
 0x30b   :  { %1043 = vrot.lane.b32.xlu0 %v2998_v53, %s2850_s18 }
 0x30d   :  { %1198 = vrot.lane.b32.xlu1 %v2998_v53, %s2851_s20 }
 0x311   :  { %1515 = vrot.lane.b32.xlu1 %v2998_v53, %s2852_s21 }
 0x32a   :  { %936 = vadd.xlane.f32.xlu0 %v935_v7 }
 0x335   :  { %891 = vmax.xlane.f32.xlu1 %v890_v9 }
 0x340   :  { %1439 = vrot.lane.b32.xlu0 %v3000_v55, %s2852_s21 }
 0x346   :  { %1677 = vrot.lane.b32.xlu1 %v3000_v55, %s2853_s22 }
 0x35f   :  { %879 = vmax.xlane.f32.xlu0 %v878_v11 }
 0x379   :  { %v919_v12 = vpop.xlane.xlu1 %918 }
 0x37a   :  { %2716 = vrcp.f32 %v919_v12 }
 0x37d   :  { %v931_v13 = vpop.xlane.xlu0 %930 }
 0x37e   :  { %2718 = vrcp.f32 %v931_v13  ;;  %v922_v14 = vpop.xlane.xlu1 %921 }
 0x37f   :  { %2720 = vrcp.f32 %v922_v14 }
 0x382   :  { %v934_v15 = vpop.xlane.xlu0 %933 }
 0x383   :  { %2722 = vrcp.f32 %v934_v15  ;;  %v1829_v15 = vld [vmem:[%s3290_s3 + $0x18] sm:$0xff] }
 0x384   :  { %v2717_v16 = vpop.eup %2716 }
 0x385   :  { %v949_v17 = vmul.f32 %v2717_v16, %v2705_v54  ;;  %v925_v18 = vpop.xlane.xlu1 %924 }
 0x386   :  { %2724 = vrcp.f32 %v925_v18  ;;  %v1044_v19 = vpop.permute.xlu0 %1043 }
 0x387   :  { %957 = vst.msk [vmem:[#allocation8] sm:$0xff] %vm228_vm9, %v949_v17  ;;  %2557 = vmatmul.mubr.msk.f32.vlgmr.msra.gmra.mrb[6].mxu0 %vm228_vm9, %v949_v17  ;;  %2560 = vmatpush3.msra.mxu1 %v1044_v19  ;;  %v2426_v19 = vld [vmem:[%s3291_s4] ss:$0 sm:$0xff] }
 0x388   :  { %v2719_v55 = vpop.eup %2718  ;;  %2566 = vmatprep.mubr.msk.f32.mxu0 %vm2842_vm8, %v2841_v50  ;;  %2569 = vmatprep.subr.mxu1 %v2841_v50 }
 0x389   :  { %v2721_v20 = vpop.eup %2720  ;;  %v953_v21 = vmul.f32 %v2719_v55, %v2707_v59  ;;  %v1123_v22 = vpop.permute.xlu1 %1122 }
 0x38a   :  { %v950_v23 = vmul.f32 %v2721_v20, %v2709_v60  ;;  %2565 = vmatpush3.msra.mxu0 %v1123_v22 }
 0x38b   :  { %961 = vst.msk [vmem:[#allocation8 + $0x20] sm:$0xff] %vm228_vm9, %v953_v21  ;;  %2562 = vmatmul.mubr.msk.f32.vlgmr.msra.gmra.mrb[12].mxu1 %vm228_vm9, %v953_v21  ;;  %2574 = vmatprep.subr.mxu0 %v1274_v40 }
 0x38c   :  { %958 = vst.msk [vmem:[#allocation8 + $0x8] sm:$0xff] %vm228_vm9, %v950_v23  ;;  %v1120_v24 = vadd.f32 %v950_v23, %v949_v17  ;;  %2567 = vmatmul.mubr.msk.f32.vlgmr.msra.gmra.mrb[8].mxu0 %vm228_vm9, %v950_v23  ;;  %2571 = vmatprep.mubr.msk.f32.mxu1 %vm2842_vm8, %v2841_v50 }
 0x38d   :  { %v2723_v25 = vpop.eup %2722  ;;  %v1199_v26 = vpop.permute.xlu1 %1198  ;;  %2575 = vmatpush3.msra.mxu0 %v1274_v40 }
 0x38e   :  { %v954_v27 = vmul.f32 %v2723_v25, %v2711_v63  ;;  %2570 = vmatpush3.msra.mxu1 %v1199_v26  ;;  %2579 = vmatprep.subr.mxu0 %v1119_v41  ;;  %v1591_v63 = vld [vmem:[%s3290_s3 + $0x10] sm:$0xff] }
 0x38f   :  { %2584 = vmatprep.subr.mxu1 %v2841_v50 }
 0x390   :  { %v2725_v28 = vpop.eup %2724  ;;  %962 = vst.msk [vmem:[#allocation8 + $0x28] sm:$0xff] %vm228_vm9, %v954_v27  ;;  %v1121_v29 = vadd.f32 %v954_v27, %v953_v21  ;;  %2572 = vmatmul.mubr.msk.f32.vlgmr.msra.gmra.mrb[14].mxu1 %vm228_vm9, %v954_v27 }
 0x391   :  { %v951_v30 = vmul.f32 %v2725_v28, %v3073_v1  ;;  %2586 = vmatprep.mubr.msk.f32.mxu1 %vm2842_vm8, %v2841_v50  ;;  %v1516_v34 = vpop.permute.xlu1 %1515 }
 0x393   :  { %959 = vst.msk [vmem:[#allocation8 + $0x10] sm:$0xff] %vm228_vm9, %v951_v30  ;;  %v3115_v31 = vadd.f32 %v1120_v24, %v951_v30 }
 0x3b7   :  { %v937_v32 = vpop.xlane.xlu0 %936 }
 0x3b8   :  { %2726 = vrcp.f32 %v937_v32 }
 0x3bb   :  { %v1440_v33 = vpop.permute.xlu0 %1439 }
 0x3bc   :  { %2585 = vmatpush3.msra.mxu1 %v1440_v33 }
 0x3bd   :  { %2587 = vmatmul.mubr.msk.f32.vlgmr.msra.gmra.mrb[16].mxu1 %vm228_vm9, %v951_v30  ;;  %2589 = vmatprep.subr.mxu1 %v2841_v50 }
 0x3be   :  { %2590 = vmatpush3.msra.mxu1 %v1516_v34  ;;  %2591 = vmatprep.mubr.msk.f32.mxu1 %vm2842_vm8, %v2841_v50 }
 0x3bf   :  { %2599 = vmatprep.subr.mxu1 %v2841_v50 }
 0x3c2   :  { %v2727_v35 = vpop.eup %2726  ;;  %v892_v36 = vpop.xlane.xlu1 %891 }
 0x3c3   :  { %v955_v37 = vmul.f32 %v2727_v35, %v3082_v6  ;;  %v900_v42 = vsub.f32 %v3086_v8, %v892_v36  ;;  %v1974_v36 = vld [vmem:[%s3292_s5 + $0x8] sm:$0xff] }
 0x3c5   :  { %963 = vst.msk [vmem:[#allocation8 + $0x30] sm:$0xff] %vm228_vm9, %v955_v37  ;;  %2592 = vmatmul.mubr.msk.f32.vlgmr.msra.gmra.mrb[18].mxu1 %vm228_vm9, %v955_v37  ;;  %v1438_v38 = vadd.f32 %v1121_v29, %v955_v37  ;;  %v915_v46 = vmul.f32 1.442695, %v900_v42  ;;  %v2068_v42 = vld [vmem:[%s3294_s7 + $0x8] sm:$0xff] }
 0x3c6   :  { %v1678_v39 = vpop.permute.xlu1 %1677  ;;  %2601 = vmatprep.mubr.msk.f32.mxu1 %vm2842_vm8, %v2841_v50 }
 0x3c7   :  { %2600 = vmatpush3.msra.mxu1 %v1678_v39  ;;  %v1976_v39 = vld [vmem:[%s3292_s5 + $0x18] sm:$0xff] }
 0x3ec   :  { %v880_v44 = vpop.xlane.xlu0 %879 }
 0x3ed   :  { %v896_v45 = vsub.f32 %v3093_v10, %v880_v44  ;;  %v2069_v44 = vld [vmem:[%s3294_s7 + $0x10] sm:$0xff] }
 0x3ef   :  { %v907_v47 = vmul.f32 1.442695, %v896_v45 }
 0x3f1   :  { %2728 = vpow2.f32 %v907_v47 }
 0x3f2   :  { %2730 = vpow2.f32 %v915_v46  ;;  %v2070_v46 = vld [vmem:[%s3294_s7 + $0x18] sm:$0xff] }
 0x3f3   :  { %v2664_v47 = vpack.c.bf16 %v2070_v46, %v2069_v44 }
 0x3fb   :  { %v2729_v48 = vpop.eup %2728 }
 0x3fc   :  { %v926_v51 = vsel %vm228_vm9, %v2729_v48, 0.0  ;;  %v2731_v52 = vpop.eup %2730 }
 0x3fd   :  { %927 = vadd.xlane.f32.xlu0 %v926_v51  ;;  %v938_v54 = vsel %vm228_vm9, %v2731_v52, 0.0  ;;  %v2072_v51 = vld [vmem:[%s3294_s7 + $0x28] sm:$0xff] }
 0x401   :  { %939 = vadd.xlane.f32.xlu0 %v938_v54 }
 0x417   :  { %1753 = vrot.lane.b32.xlu0 %v2998_v53, %s2853_s22 }
 0x45a   :  { %v1039_v56 = vpop.f32.mrb[6].mxu0 }
 0x45b   :  { %v2558_v57 = vpop.f32.mrb[7].mxu0 }
 0x45e   :  { %v1115_v58 = vpop.f32.mrb[12].mxu1 }
 0x45f   :  { %v2563_v59 = vpop.f32.mrb[13].mxu1  ;;  %v1194_v60 = vpop.f32.mrb[8].mxu0 }
 0x460   :  { %v2568_v61 = vpop.f32.mrb[9].mxu0  ;;  %2576 = vmatprep.mubr.msk.f32.mxu0 %vm228_vm9, %v1194_v60 }
 0x463   :  { %v1270_v62 = vpop.f32.mrb[14].mxu1 }
 0x464   :  { %v2573_v0 = vpop.f32.mrb[15].mxu1  ;;  %2577 = vmatmul.mubr.msk.f32.vlgmr.msra.gmra.mrb[10].mxu0 %vm228_vm9, %v1270_v62  ;;  %v2427_v62 = vld [vmem:[%s3296_s9] ss:$0 sm:$0xff] }
 0x465   :  { %2581 = vmatprep.mubr.msk.f32.mxu0 %vm228_vm9, %v1039_v56  ;;  %2580 = vmatpush3.msra.mxu0 %v1119_v41  ;;  %v2067_v41 = vld [vmem:[%s3294_s7] sm:$0xff] }
 0x466   :  { %2594 = vmatprep.subr.mxu0 %v1591_v63  ;;  %v2660_v45 = vpack.c.bf16 %v2068_v42, %v2067_v41 }
 0x46c   :  { %2582 = vmatmul.mubr.msk.f32.vlgmr.msra.gmra.mrb[10].mxu0 %vm228_vm9, %v1115_v58 }
 0x46d   :  { %2595 = vmatpush3.msra.mxu0 %v1591_v63 }
 0x46e   :  { %2604 = vmatprep.subr.mxu0 %v2841_v50 }
 0x48a   :  { %v928_v53 = vpop.xlane.xlu0 %927 }
 0x48b   :  { %2732 = vrcp.f32 %v928_v53 }
 0x48e   :  { %v940_v1 = vpop.xlane.xlu0 %939 }
 0x48f   :  { %2734 = vrcp.f32 %v940_v1  ;;  %v2428_v1 = vld [vmem:[%s3297_s10] ss:$0 sm:$0xff] }
 0x490   :  { %v1511_v2 = vpop.f32.mrb[16].mxu1 }
 0x491   :  { %v2588_v3 = vpop.f32.mrb[17].mxu1  ;;  %2596 = vmatprep.mubr.msk.f32.mxu0 %vm228_vm9, %v1511_v2 }
 0x492   :  { %v1754_v9 = vpop.permute.xlu0 %1753 }
 0x495   :  { %v2733_v4 = vpop.eup %2732 }
 0x496   :  { %v952_v5 = vmul.f32 %v2733_v4, %v2729_v48  ;;  %v2071_v48 = vld [vmem:[%s3294_s7 + $0x20] sm:$0xff] }
 0x498   :  { %960 = vst.msk [vmem:[#allocation8 + $0x18] sm:$0xff] %vm228_vm9, %v952_v5  ;;  %v1587_v6 = vpop.f32.mrb[18].mxu1  ;;  %2602 = vmatmul.mubr.msk.f32.vlgmr.msra.gmra.mrb[20].mxu1 %vm228_vm9, %v952_v5  ;;  %v1675_v7 = vadd.f32 %v3115_v31, %v952_v5 }
 0x499   :  { %v2735_v8 = vpop.eup %2734  ;;  %v2593_v10 = vpop.f32.mrb[19].mxu1  ;;  %2597 = vmatmul.mubr.msk.f32.vlgmr.msra.gmra.mrb[10].mxu0 %vm228_vm9, %v1587_v6  ;;  %v2073_v6 = vld [vmem:[%s3294_s7 + $0x30] sm:$0xff] }
 0x49a   :  { %v956_v11 = vmul.f32 %v2735_v8, %v2731_v52  ;;  %2605 = vmatpush3.msra.mxu0 %v1754_v9  ;;  %2606 = vmatprep.mubr.msk.f32.mxu0 %vm2842_vm8, %v2841_v50  ;;  %v1913_v12 = vmul.f32 0.25, %v1675_v7  ;;  %v2668_v52 = vpack.c.bf16 %v2072_v51, %v2071_v48  ;;  %v2074_v7 = vld [vmem:[%s3294_s7 + $0x38] sm:$0xff]  ;;  %v2429_v9 = vld [vmem:[%s3293_s6] ss:$0 sm:$0xff]  ;;  %s2854_s6 = smov [#allocation6]  }
 0x49b   :  { %2609 = vmatprep.subr.mxu0 %v1829_v15  ;;  %v2672_v8 = vpack.c.bf16 %v2074_v7, %v2073_v6  ;;  %s2360_s7 = sshll.u32 %s2854_s6, 4  ;;  %s2361_s7 = int_to_ptr.vmem [resolvable:$true] %s2360_s7 }
 0x49c   :  { %964 = vst.msk [vmem:[#allocation8 + $0x38] sm:$0xff] %vm228_vm9, %v956_v11  ;;  %v1676_v13 = vadd.f32 %v1438_v38, %v956_v11  ;;  %1915 = vst.msk [vmem:[#allocation6] sm:$0xff] %vm228_vm9, %v1913_v12  ;;  %v1975_v38 = vld [vmem:[%s3292_s5 + $0x10] sm:$0xff]  ;;  %p2771_p9 = scmp.lt.s32.totalorder %s2361_s7, %s2361_s7 }
 0x49d   :  { %2607 = vmatmul.mubr.msk.f32.vlgmr.msra.gmra.mrb[12].mxu0 %vm228_vm9, %v956_v11  ;;  %v2656_v40 = vpack.c.bf16 %v1976_v39, %v1975_v38 }
 0x49e   :  { %v1914_v14 = vmul.f32 0.25, %v1676_v13  ;;  %2610 = vmatpush3.msra.mxu0 %v1829_v15 }
 0x49f   :  { %2661 = vmatprep.subr.bf16.mxu0 %v2660_v45 }
 0x4a0   :  { %1916 = vst.msk [vmem:[#allocation6 + $0x8] sm:$0xff] %vm228_vm9, %v1914_v14 }
 0x56b   :  { %v1749_v16 = vpop.f32.mrb[20].mxu1 }
 0x56c   :  { %v2603_v17 = vpop.f32.mrb[21].mxu1  ;;  %2611 = vmatprep.mubr.msk.f32.mxu0 %vm228_vm9, %v1749_v16  ;;  %v2432_v16 = vld [vmem:[%s3295_s8] ss:$0 sm:$0xff]  ;;  %s2766_s8 = scalar_lea.vmem %s2361_s7, 256 }
 0x56d   :  { %p2767_p8 = scmp.ne.s32.totalorder %s2361_s7, %s2766_s8  ;;  %p2772_p10 = scmp.lt.s32.totalorder %s2766_s8, %s2766_s8 }
 0x56f   :  { %p2773_p11 = por %p2772_p10, %p2771_p9 }
 0x570   :  { %v1825_v50 = vpop.f32.mrb[12].mxu0 }
 0x571   :  { %v2608_v18 = vpop.f32.mrb[13].mxu0  ;;  %2612 = vmatmul.mubr.msk.f32.vlgmr.msra.gmra.mrb[10].mxu0 %vm228_vm9, %v1825_v50  ;;  %p2774_p12 = pnand %p2773_p11, %p2767_p8 }
 0x572   :  { %2663 = vmatpush3.bf16.msra.mxu0 %v2660_v45 }
 0x573   :  { %2665 = vmatprep.subr.bf16.mxu0 %v2664_v47 }
 0x576   :  { %2667 = vmatpush3.bf16.msra.mxu0 %v2664_v47 }
 0x577   :  { %2669 = vmatprep.subr.bf16.mxu0 %v2668_v52 }
 0x57a   :  { %2671 = vmatpush3.bf16.msra.mxu0 %v2668_v52 }
 0x57b   :  { %2673 = vmatprep.subr.bf16.mxu0 %v2672_v8 }
 0x57e   :  { %2675 = vmatpush3.bf16.msra.mxu0 %v2672_v8 }
 0x644   :  { %v2613_v55 = vpop.f32.mrb[10].mxu0 }
 0x645   :  { %v1925_v20 = vadd.f32 %v2613_v55, %v2426_v19  ;;  %v1902_v21 = vpop.f32.mrb[11].mxu0 }
 0x646   :  { %v1924_v22 = vadd.f32 %v2426_v19, %v1902_v21 }
 0x647   :  { %v1927_v23 = vadd.f32 %v1925_v20, %v2985_v49 }
 0x648   :  { %v1926_v24 = vadd.f32 %v1924_v22, %v2976_v43  ;;  %v1973_v43 = vld [vmem:[%s3292_s5] sm:$0xff] }
 0x649   :  { %v1933_v25 = vsel %vm143_vm7, %v1927_v23, 0.0  ;;  %v2652_v37 = vpack.c.bf16 %v1974_v36, %v1973_v43 }
 0x64a   :  { %1934 = vadd.xlane.f32.xlu0 %v1933_v25  ;;  %v1930_v26 = vsel %vm143_vm7, %v1926_v24, 0.0 }
 0x64b   :  { %1931 = vadd.xlane.f32.xlu1 %v1930_v26  ;;  %2653 = vmatprep.subr.bf16.mxu1 %v2652_v37 }
 0x64c   :  { %2655 = vmatpush3.bf16.msra.mxu1 %v2652_v37 }
 0x64d   :  { %2657 = vmatprep.subr.bf16.mxu1 %v2656_v40 }
 0x650   :  { %2659 = vmatpush3.bf16.msra.mxu1 %v2656_v40 }
 0x6d7   :  { %v1935_v27 = vpop.xlane.xlu0 %1934 }
 0x6d8   :  { %v1938_v28 = vmul.f32 0.03125, %v1935_v27  ;;  %v1932_v29 = vpop.xlane.xlu1 %1931 }
 0x6d9   :  { %v1937_v30 = vmul.f32 0.03125, %v1932_v29 }
 0x6da   :  { %v1940_v31 = vsub.f32 %v1927_v23, %v1938_v28 }
 0x6db   :  { %v1939_v32 = vsub.f32 %v1926_v24, %v1937_v30 }
 0x6dc   :  { %v1942_v33 = vmul.f32 %v1940_v31, %v1940_v31 }
 0x6dd   :  { %v1941_v34 = vmul.f32 %v1939_v32, %v1939_v32 }
 0x6de   :  { %v1946_v35 = vsel %vm143_vm7, %v1942_v33, 0.0 }
 0x6df   :  { %1947 = vadd.xlane.f32.xlu0 %v1946_v35  ;;  %v1943_v49 = vsel %vm143_vm7, %v1941_v34, 0.0 }
 0x6e0   :  { %1944 = vadd.xlane.f32.xlu1 %v1943_v49 }
 0x76c   :  { %v1948_v54 = vpop.xlane.xlu0 %1947 }
 0x76d   :  { %v1950_v56 = vmul.f32 0.03125, %v1948_v54  ;;  %v1945_v57 = vpop.xlane.xlu1 %1944 }
 0x76e   :  { %v1949_v58 = vmul.f32 0.03125, %v1945_v57 }
 0x76f   :  { %v1952_v59 = vadd.f32 1e-05, %v1950_v56 }
 0x770   :  { %v1951_v60 = vadd.f32 1e-05, %v1949_v58 }
 0x771   :  { %2736 = vrsqrt.f32 %v1952_v59 }
 0x772   :  { %2738 = vrsqrt.f32 %v1951_v60 }
 0x77b   :  { %v2737_v61 = vpop.eup %2736 }
 0x77c   :  { %v2739_v63 = vpop.eup %2738  ;;  %v1956_v0 = vmul.f32 %v2737_v61, %v1940_v31 }
 0x77d   :  { %v1955_v53 = vmul.f32 %v2739_v63, %v1939_v32 }
 0x77e   :  { %v1964_v2 = vmul.f32 %v2427_v62, %v1956_v0 }
 0x77f   :  { %v1963_v3 = vmul.f32 %v2427_v62, %v1955_v53 }
 0x780   :  { %v1972_v5 = vadd.f32 %v2428_v1, %v1964_v2 }
 0x781   :  { %v1971_v4 = vadd.f32 %v2428_v1, %v1963_v3 }
 0x783   :  { %2622 = vmatprep.mubr.msk.f32.mxu1 %vm143_vm7, %v1971_v4 }
 0x784   :  { %2623 = vmatmul.mubr.msk.f32.vlgmr.msra.gmra.mrb[22].mxu1 %vm143_vm7, %v1972_v5 }
 0x857   :  { %v2624_v10 = vpop.f32.mrb[22].mxu1 }
 0x858   :  { %v2062_v11 = vadd.f32 %v2624_v10, %v2429_v9  ;;  %v2056_v12 = vpop.f32.mrb[23].mxu1 }
 0x859   :  { %v2057_v13 = vadd.f32 %v2429_v9, %v2056_v12 }
 0x85a   :  { %v2066_v15 = vmax.f32 %v2062_v11, 0.0 }
 0x85b   :  { %v2065_v14 = vmax.f32 %v2057_v13, 0.0 }
 0x85d   :  { %2641 = vmatprep.mubr.msk.f32.mxu0 %vm2082_vm10, %v2065_v14 }
 0x85e   :  { %2642 = vmatmul.mubr.msk.f32.vlgmr.msra.gmra.mrb[14].mxu0 %vm2082_vm10, %v2066_v15 }
 0x931   :  { %v2643_v17 = vpop.f32.mrb[14].mxu0 }
 0x932   :  { %v2161_v50 = vadd.f32 %v2643_v17, %v2432_v16  ;;  %v2155_v18 = vpop.f32.mrb[15].mxu0 }
 0x933   :  { %v2156_v19 = vadd.f32 %v2432_v16, %v2155_v18 }
 0x934   :  { %v2165_v55 = vadd.f32 %v2161_v50, %v1972_v5 }
 0x935   :  { %v2164_v20 = vadd.f32 %v2156_v19, %v1971_v4 }
 0x936   :  { %v2171_v21 = vsel %vm143_vm7, %v2165_v55, 0.0 }
 0x937   :  { %2172 = vadd.xlane.f32.xlu0 %v2171_v21  ;;  %v2168_v22 = vsel %vm143_vm7, %v2164_v20, 0.0 }
 0x938   :  { %2169 = vadd.xlane.f32.xlu1 %v2168_v22 }
 0x9c4   :  { %v2173_v23 = vpop.xlane.xlu0 %2172 }
 0x9c5   :  { %v2175_v24 = vmul.f32 0.03125, %v2173_v23  ;;  %v2170_v25 = vpop.xlane.xlu1 %2169 }
 0x9c6   :  { %v2174_v26 = vmul.f32 0.03125, %v2170_v25 }
 0x9c7   :  { %v2177_v27 = vsub.f32 %v2165_v55, %v2175_v24 }
 0x9c8   :  { %v2176_v28 = vsub.f32 %v2164_v20, %v2174_v26 }
 0x9c9   :  { %v2179_v29 = vmul.f32 %v2177_v27, %v2177_v27 }
 0x9ca   :  { %v2178_v30 = vmul.f32 %v2176_v28, %v2176_v28 }
 0x9cb   :  { %v2183_v31 = vsel %vm143_vm7, %v2179_v29, 0.0 }
 0x9cc   :  { %2184 = vadd.xlane.f32.xlu0 %v2183_v31  ;;  %v2180_v32 = vsel %vm143_vm7, %v2178_v30, 0.0 }
 0x9cd   :  { %2181 = vadd.xlane.f32.xlu1 %v2180_v32 }
 0x9ce   :  { %2777 = shalt.err (!%p2774_p12)
}
 0x9cf   :  { %s2778_s19 = scalar_lea.hbm %s3301_s14, 256 }
 0x9d0   :  { %p2779_p13 = scmp.ne.s32.totalorder %s3301_s14, %s2778_s19  ;;  %p2782_p0 = scmp.lt.u32.totalorder %s2778_s19, %s3301_s14 }
 0x9d2   :  { %p2784_p1 = pnand %p2782_p0, %p2779_p13 }
 0x9d4   :  { %2787 = shalt.err (!%p2784_p1)
}
 0x9d5   :  { %s2855_s30 = smov 128   ;;  %s2856_s3 = smov 8  }
 0x9d6   :  { %2366 = dma.vmem_to_hbm [thread:$0]  %s2361_s7, 256, %s3301_s14, [#allocation7], %s2855_s30, %s2855_s30, %s2856_s3  }
 0x9d7   :  { %s2857_s17 = smov [#allocation8]  }
 0x9d8   :  { %s2372_s18 = sshll.u32 %s2857_s17, 4  ;;  %s2373_s18 = int_to_ptr.vmem [resolvable:$true] %s2372_s18 }
 0x9d9   :  { %s2788_s20 = scalar_lea.vmem %s2373_s18, 1024  ;;  %p2793_p3 = scmp.lt.s32.totalorder %s2373_s18, %s2373_s18 }
 0x9da   :  { %p2789_p2 = scmp.ne.s32.totalorder %s2373_s18, %s2788_s20  ;;  %p2794_p4 = scmp.lt.s32.totalorder %s2788_s20, %s2788_s20 }
 0x9dc   :  { %p2795_p5 = por %p2794_p4, %p2793_p3 }
 0x9de   :  { %p2796_p6 = pnand %p2795_p5, %p2789_p2 }
 0x9e0   :  { %2799 = shalt.err (!%p2796_p6)
}
 0x9e1   :  { %s2800_s22 = scalar_lea.hbm %s3302_s15, 1024 }
 0x9e2   :  { %p2801_p7 = scmp.ne.s32.totalorder %s3302_s15, %s2800_s22  ;;  %p2804_p8 = scmp.lt.u32.totalorder %s2800_s22, %s3302_s15 }
 0x9e4   :  { %p2806_p9 = pnand %p2804_p8, %p2801_p7 }
 0x9e6   :  { %2809 = shalt.err (!%p2806_p9)
}
 0x9e7   :  { %2378 = dma.vmem_to_hbm [thread:$0]  %s2373_s18, 1024, %s3302_s15, [#allocation7], %s2855_s30, %s2855_s30, %s2856_s3   ;;  %v2858_v37 = vmov 1966171168   ;;  %v2215_v39 = vlaneseq  ;;  %vm2268_vm11 = vcmask 253952  }
 0x9e8   :  { %v2213_v38 = vunpack.c.l.s4 %v2858_v37  ;;  %v2435_v44 = vld [vmem:[%s3298_s11] ss:$0 sm:$0xff]  ;;  %s2859_s11 = smov [#allocation5]  }
 0x9e9   :  { %v2216_v41 = vshrl.u32 %v2215_v39, 7  ;;  %v2436_v47 = vld [vmem:[%s3299_s12] ss:$0 sm:$0xff]  ;;  %s2348_s12 = sshll.u32 %s2859_s11, 4  ;;  %s2349_s12 = int_to_ptr.vmem [resolvable:$true] %s2348_s12 }
 0x9ea   :  { %v2214_v40 = vunpack.c.0.s8 %v2213_v38  ;;  %s2810_s1 = scalar_lea.vmem %s2349_s12, 256  ;;  %p2815_p11 = scmp.lt.s32.totalorder %s2349_s12, %s2349_s12 }
 0x9eb   :  { %p2811_p10 = scmp.ne.s32.totalorder %s2349_s12, %s2810_s1  ;;  %p2816_p12 = scmp.lt.s32.totalorder %s2810_s1, %s2810_s1 }
 0x9ec   :  { %v2217_v51 = vsub.s32 %v2214_v40, %v2216_v41 }
 0x9ed   :  { %p2817_p13 = por %p2816_p12, %p2815_p11 }
 0x9ef   :  { %p2818_p0 = pnand %p2817_p13, %p2811_p10 }
 0xa59   :  { %v2185_v33 = vpop.xlane.xlu0 %2184 }
 0xa5a   :  { %v2187_v34 = vmul.f32 0.03125, %v2185_v33  ;;  %v2182_v35 = vpop.xlane.xlu1 %2181 }
 0xa5b   :  { %v2186_v49 = vmul.f32 0.03125, %v2182_v35 }
 0xa5c   :  { %v2189_v43 = vadd.f32 1e-05, %v2187_v34 }
 0xa5d   :  { %v2188_v36 = vadd.f32 1e-05, %v2186_v49 }
 0xa5e   :  { %2740 = vrsqrt.f32 %v2189_v43 }
 0xa5f   :  { %2742 = vrsqrt.f32 %v2188_v36 }
 0xa68   :  { %v2741_v42 = vpop.eup %2740 }
 0xa69   :  { %v2743_v45 = vpop.eup %2742  ;;  %v2193_v46 = vmul.f32 %v2741_v42, %v2177_v27 }
 0xa6a   :  { %v2192_v48 = vmul.f32 %v2743_v45, %v2176_v28 }
 0xa6b   :  { %v2201_v52 = vmul.f32 %v2435_v44, %v2193_v46 }
 0xa6c   :  { %v2200_v54 = vmul.f32 %v2435_v44, %v2192_v48 }
 0xa6d   :  { %v2209_v56 = vadd.f32 %v2436_v47, %v2201_v52 }
 0xa6e   :  { %v2208_v57 = vadd.f32 %v2436_v47, %v2200_v54 }
 0xa6f   :  { %v2278_v58 = vcombine.high %v2209_v56, %v2209_v56  ;;  %v2285_v59 = vrot.slane %v2209_v56, %v2217_v51 }
 0xa70   :  { %v2211_v60 = vcombine.high %v2208_v57, %v2208_v57  ;;  %v2218_v61 = vrot.slane %v2208_v57, %v2217_v51 }
 0xa71   :  { %v2292_v62 = vrot.slane %v2278_v58, %v2217_v51  ;;  %v2293_v63 = vcombine.high %v2285_v59, %v2285_v59  ;;  %v2301_v0 = vrot.slane %v2285_v59, %v2217_v51 }
 0xa72   :  { %v2225_v53 = vrot.slane %v2211_v60, %v2217_v51  ;;  %v2226_v1 = vcombine.high %v2218_v61, %v2218_v61  ;;  %v2234_v2 = vrot.slane %v2218_v61, %v2217_v51 }
 0xa73   :  { %v2294_v3 = vcombine.high %v2292_v62, %v2292_v62  ;;  %v2308_v4 = vrot.slane %v2292_v62, %v2217_v51  ;;  %v2315_v5 = vrot.slane %v2293_v63, %v2217_v51  ;;  %v2323_v6 = vcombine.high %v2301_v0, %v2301_v0  ;;  %2335 = vst.msk [vmem:[#allocation5 + $0x1] sm:$0x1] %vm2268_vm11, %v2301_v0 }
 0xa74   :  { %v2227_v7 = vcombine.high %v2225_v53, %v2225_v53  ;;  %v2241_v8 = vrot.slane %v2225_v53, %v2217_v51  ;;  %v2248_v9 = vrot.slane %v2226_v1, %v2217_v51  ;;  %v2256_v10 = vcombine.high %v2234_v2, %v2234_v2  ;;  %2269 = vst.msk [vmem:[#allocation5] sm:$0x1] %vm2268_vm11, %v2234_v2 }
 0xa75   :  { %v2322_v11 = vrot.slane %v2294_v3, %v2217_v51  ;;  %v2324_v12 = vcombine.high %v2308_v4, %v2308_v4  ;;  %v2325_v13 = vcombine.high %v2315_v5, %v2315_v5  ;;  %2336 = vst.msk [vmem:[#allocation5 + $0x3] sm:$0x1] %vm2268_vm11, %v2315_v5  ;;  %2337 = vst.msk [vmem:[#allocation5 + $0x5] sm:$0x1] %vm2268_vm11, %v2323_v6 }
 0xa76   :  { %2339 = vst.msk [vmem:[#allocation5 + $0x9] sm:$0x1] %vm2268_vm11, %v2308_v4  ;;  %v2255_v14 = vrot.slane %v2227_v7, %v2217_v51  ;;  %v2257_v15 = vcombine.high %v2241_v8, %v2241_v8  ;;  %v2258_v16 = vcombine.high %v2248_v9, %v2248_v9  ;;  %2270 = vst.msk [vmem:[#allocation5 + $0x2] sm:$0x1] %vm2268_vm11, %v2248_v9 }
 0xa77   :  { %2271 = vst.msk [vmem:[#allocation5 + $0x4] sm:$0x1] %vm2268_vm11, %v2256_v10  ;;  %2273 = vst.msk [vmem:[#allocation5 + $0x8] sm:$0x1] %vm2268_vm11, %v2241_v8  ;;  %v2326_v17 = vcombine.high %v2322_v11, %v2322_v11 }
 0xa78   :  { %2338 = vst.msk [vmem:[#allocation5 + $0x7] sm:$0x1] %vm2268_vm11, %v2325_v13  ;;  %2340 = vst.msk [vmem:[#allocation5 + $0xb] sm:$0x1] %vm2268_vm11, %v2322_v11  ;;  %v2259_v50 = vcombine.high %v2255_v14, %v2255_v14 }
 0xa79   :  { %2341 = vst.msk [vmem:[#allocation5 + $0xd] sm:$0x1] %vm2268_vm11, %v2324_v12  ;;  %2272 = vst.msk [vmem:[#allocation5 + $0x6] sm:$0x1] %vm2268_vm11, %v2258_v16 }
 0xa7a   :  { %2274 = vst.msk [vmem:[#allocation5 + $0xa] sm:$0x1] %vm2268_vm11, %v2255_v14  ;;  %2275 = vst.msk [vmem:[#allocation5 + $0xc] sm:$0x1] %vm2268_vm11, %v2257_v15 }
 0xa7b   :  { %2342 = vst.msk [vmem:[#allocation5 + $0xf] sm:$0x1] %vm2268_vm11, %v2326_v17  ;;  %2276 = vst.msk [vmem:[#allocation5 + $0xe] sm:$0x1] %vm2268_vm11, %v2259_v50 }
 0xa7c   :  { %2821 = shalt.err (!%p2818_p0)
}
 0xa7d   :  { %s2822_s5 = scalar_lea.hbm %s3300_s13, 256 }
 0xa7e   :  { %p2823_p1 = scmp.ne.s32.totalorder %s3300_s13, %s2822_s5  ;;  %p2826_p2 = scmp.lt.u32.totalorder %s2822_s5, %s3300_s13 }
 0xa80   :  { %p2828_p3 = pnand %p2826_p2, %p2823_p1 }
 0xa82   :  { %2831 = shalt.err (!%p2828_p3)
}
 0xa83   :  { %2354 = dma.vmem_to_hbm [thread:$0]  %s2349_s12, 256, %s3300_s13, [#allocation4], %s2839_s28, %s2839_s28, %s2840_s29  }
 0xa84   :  { %2834 = dma.done.wait [#allocation4], 256  }
 0xa85   :  { %2835 = vsyncadd [#allocation4], 4294967040 }
 0xa86   :  { %2836 = dma.done.wait [#allocation7], 1280  }
 0xa87   :  { %2837 = vsyncadd [#allocation7], 4294966016 }
 0xa88   :  { %2388 = vsyncpa [#allocation3], 1 }
 0xa89   :  { %2389 = vsyncpa [#allocation4], 1 }
 0xa8a   :  { %2390 = vsyncpa [#allocation7], 1 }

</bundles_post_ra>
